<compile_context>
chip_gen: v5e
topology: v5e:2x2
jax: 0.10.0
libtpu: 0.0.40
codegen_flags: <defaults>
</compile_context>

<pallas_src>
import jax
import jax.numpy as jnp
from jax import lax
from jax.experimental import pallas as pl
from jax.experimental.pallas import tpu as pltpu

EPS = 1e-5
_HIGHEST = jax.lax.Precision.HIGHEST


def _erf(z):
    """erf via Abramowitz & Stegun 7.1.26 (|err| <= 1.5e-7): exp/mul/add/select only,
    guaranteed to lower on TPU (no reliance on an erf primitive lowering)."""
    a1, a2, a3, a4, a5 = (0.254829592, -0.284496736, 1.421413741,
                          -1.453152027, 1.061405429)
    p = 0.3275911
    sign = jnp.where(z >= 0.0, 1.0, -1.0)
    za = jnp.abs(z)
    # Exact divide (not approx reciprocal): its error would be amplified by ~|x| in GELU
    # and eat into the validation tolerance; the divide is not on the binding slot.
    t = 1.0 / (1.0 + p * za)
    poly = ((((a5 * t + a4) * t + a3) * t + a2) * t + a1) * t
    return sign * (1.0 - poly * jnp.exp(-za * za))


def _gelu_exact(x):
    """Exact (erf-based) GELU, matching PyTorch nn.GELU() default."""
    return 0.5 * x * (1.0 + _erf(x * 0.7071067811865476))


def _cnn_block_kernel(x_ref, w_ref, b_ref, g_ref, be_ref, p_ref, o_ref):
    """All residual CNN layers for BB batch elements, fully fused.

    x_ref  : (BB, L, C)         input block (channels-last)
    w_ref  : (layers*3, C, C)   bf16 conv tap weights, per layer ordered [tap l-1, l, l+1]
    b_ref  : (layers, 1, C)     conv bias (f32)
    g_ref  : (layers, 1, C)     GroupNorm weight (f32)
    be_ref : (layers, 1, C)     GroupNorm bias (f32)
    p_ref  : (C, C)             group-average matrix, 1/(L*C_per_group) within a group
    o_ref  : (BB, L, C)         output block (already divided by layer count)
    """
    BB, L, C = x_ref.shape
    layers = b_ref.shape[0]

    p = p_ref[...]                                      # (C, C)
    x = x_ref[...].astype(jnp.float32)                  # (BB, L, C), resident in VMEM
    zrow = jnp.zeros((BB, 1, C), jnp.float32)           # hoisted: reused by every layer

    # Static Python loop is fine for a handful of layers; switch to lax.fori_loop with
    # dynamic w_ref indexing if layer_num grows large.
    for layer in range(layers):
        # --- Conv1d(k=3, pad=1): three MXU matmuls with M = BB*L (bf16 in, f32 acc) -----
        xb = x.astype(jnp.bfloat16).reshape(BB * L, C)
        t0 = jnp.dot(xb, w_ref[3 * layer + 0], preferred_element_type=jnp.float32)
        t1 = jnp.dot(xb, w_ref[3 * layer + 1], preferred_element_type=jnp.float32)
        t1 = t1 + b_ref[layer]                          # bias added in 2D (1, C) broadcast
        t2 = jnp.dot(xb, w_ref[3 * layer + 2], preferred_element_type=jnp.float32)
        t0 = t0.reshape(BB, L, C)
        t1 = t1.reshape(BB, L, C)
        t2 = t2.reshape(BB, L, C)
        # Realign the +/-1 taps along L (per batch element): shift one row, zero boundary.
        y = (t1
             + jnp.concatenate([zrow, t0[:, :L - 1, :]], axis=1)     # y[l] += t0[l-1]
             + jnp.concatenate([t2[:, 1:, :], zrow], axis=1))        # y[l] += t2[l+1]

        # --- GroupNorm: batched group-average matmuls (M = BB), centered two-pass --------
        s1 = jnp.sum(y, axis=1)                                               # (BB, C)
        mean = jnp.dot(s1, p, precision=_HIGHEST,
                       preferred_element_type=jnp.float32)                    # (BB, C)
        yc = y - mean[:, None, :]
        s2 = jnp.sum(yc * yc, axis=1)                                         # (BB, C)
        var = jnp.dot(s2, p, precision=_HIGHEST,
                      preferred_element_type=jnp.float32)                     # (BB, C)
        scale = g_ref[layer] * lax.rsqrt(var + EPS)                           # (BB, C)
        h = yc * scale[:, None, :] + be_ref[layer]

        # --- GELU (exact, erf-based -- PyTorch default); Dropout = identity (eval) -------
        h = _gelu_exact(h)

        # --- residual ---------------------------------------------------------------------
        x = h + x

    # Fold the final "/ layer_num" into the store (no extra XLA pass over HBM).
    o_ref[...] = (x * (1.0 / layers)).astype(o_ref.dtype)


def _param_bytes(layer_num, C):
    # bf16 tap weights + f32 bias/gamma/beta + f32 group-average matrix
    return layer_num * 3 * C * C * 2 + layer_num * 3 * C * 4 + C * C * 4


def _vmem_footprint(bb, L, C, layer_num, io_itemsize):
    act_io = bb * L * C * io_itemsize
    act_f32 = bb * L * C * 4
    # 2x double-buffered input block + 2x output block, 2x pipelined parameter blocks,
    # ~10 live f32 temporaries inside the layer loop, + 2 MiB compiler-internal headroom.
    return 4 * act_io + 2 * _param_bytes(layer_num, C) + 10 * act_f32 + (2 << 20)


def cnn_block_forward(embedding, params, num_groups=8):
    """Pallas version of CNNBlock.forward (eval mode).

    embedding : (B, L, C) channels-last (same as the PyTorch call site; the transpose(1,2)
                pair cancels and is absorbed into the weight layout).
    params    : list of (w, b, gamma, beta) per layer in PyTorch layouts:
                w (C_out, C_in, 3), b (C,), gamma (C,), beta (C,).
    """
    B, L, C = embedding.shape
    layer_num = len(params)
    cg = C // num_groups
    io_itemsize = jnp.dtype(embedding.dtype).itemsize

    # --- per-generation VMEM budget (<= ~54 MiB on v7x, up to ~108 MiB on v5e/v6e) -------
    try:
        vmem_cap = int(pltpu.get_tpu_info().vmem_capacity_bytes)
    except Exception:
        vmem_cap = 64 * 1024 * 1024
    vmem_budget = min(int(vmem_cap * 0.85), 112 * 1024 * 1024)

    # --- per-step batch tile: aim for >= 512 conv-matmul rows, shrink until VMEM fits ----
    bb = max(1, min(B, -(-512 // max(L, 1))))
    while bb > 1 and _vmem_footprint(bb, L, C, layer_num, io_itemsize) > vmem_budget:
        bb = max(1, bb // 2)
    vmem_limit = int(min(max(_vmem_footprint(bb, L, C, layer_num, io_itemsize),
                             16 * 1024 * 1024), vmem_budget))

    # --- parameters in kernel-ready layouts -----------------------------------------------
    # Conv taps: (layers*3, C_in, C_out), bf16 for full-rate MXU (f32 accumulation in-kernel).
    w_taps = jnp.concatenate(
        [jnp.transpose(w, (2, 1, 0)) for (w, _, _, _) in params], axis=0
    ).astype(jnp.bfloat16)
    b_all = jnp.stack([b.reshape(1, C) for (_, b, _, _) in params]).astype(jnp.float32)
    gamma_all = jnp.stack([g.reshape(1, C) for (_, _, g, _) in params]).astype(jnp.float32)
    beta_all = jnp.stack([bt.reshape(1, C) for (_, _, _, bt) in params]).astype(jnp.float32)

    # Group-average matrix: (s @ P)[c] = mean over the group containing channel c.
    # NOTE: bakes the full L into 1/(L*cg) -- correct because every block spans all of L.
    g_idx = jnp.arange(C) // cg
    p_mat = (g_idx[:, None] == g_idx[None, :]).astype(jnp.float32) / float(L * cg)

    # Pad the batch up to a multiple of the per-step tile (padded rows are discarded).
    Bp = -(-B // bb) * bb
    emb_in = embedding
    if Bp != B:
        emb_in = jnp.concatenate(
            [embedding, jnp.zeros((Bp - B, L, C), embedding.dtype)], axis=0)

    rep = lambda n: (lambda i: (0,) * n)
    out = pl.pallas_call(
        _cnn_block_kernel,
        out_shape=jax.ShapeDtypeStruct((Bp, L, C), embedding.dtype),
        grid=(Bp // bb,),
        in_specs=[
            pl.BlockSpec((bb, L, C), lambda i: (i, 0, 0)),          # activations (per tile)
            # Constant-index parameter blocks. For very large C, additionally pass
            # pipeline_mode=pl.Buffered(1) here to drop their second pipeline buffer.
            pl.BlockSpec((layer_num * 3, C, C), rep(3)),            # conv tap weights (bf16)
            pl.BlockSpec((layer_num, 1, C), rep(3)),                # conv bias
            pl.BlockSpec((layer_num, 1, C), rep(3)),                # gn gamma
            pl.BlockSpec((layer_num, 1, C), rep(3)),                # gn beta
            pl.BlockSpec((C, C), rep(2)),                           # group-average matrix
        ],
        out_specs=pl.BlockSpec((bb, L, C), lambda i: (i, 0, 0)),
        compiler_params=pltpu.CompilerParams(
            dimension_semantics=("parallel",),
            vmem_limit_bytes=vmem_limit),
    )(emb_in, w_taps, b_all, gamma_all, beta_all, p_mat)
    return out[:B] if Bp != B else out


# ----------------------------- pure-JAX references -----------------------------
def _ref_forward(embedding, params, num_groups=8, matmul_dtype=jnp.float32):
    """Pure-JAX reference mirroring the PyTorch module (eval mode).

    matmul_dtype=bfloat16 reproduces the kernel's bf16-operand / f32-accumulate conv
    matmuls; matmul_dtype=float32 is the strict (PyTorch-faithful) f32 path.
    """
    B, L, C = embedding.shape
    cg = C // num_groups
    prec = _HIGHEST if matmul_dtype == jnp.float32 else None
    x = embedding.astype(jnp.float32)
    for (w, b, gamma, beta) in params:
        wk = jnp.transpose(w, (2, 1, 0)).astype(matmul_dtype)          # (3, C_in, C_out)
        xp = jnp.pad(x, ((0, 0), (1, 1), (0, 0))).astype(matmul_dtype)
        y = (jnp.matmul(xp[:, :-2], wk[0], precision=prec,
                        preferred_element_type=jnp.float32)
             + jnp.matmul(xp[:, 1:-1], wk[1], precision=prec,
                          preferred_element_type=jnp.float32)
             + jnp.matmul(xp[:, 2:], wk[2], precision=prec,
                          preferred_element_type=jnp.float32)) + b
        yg = y.reshape(B, L, num_groups, cg)
        mean = yg.mean(axis=(1, 3), keepdims=True)
        var = ((yg - mean) ** 2).mean(axis=(1, 3), keepdims=True)
        yn = ((yg - mean) / jnp.sqrt(var + EPS)).reshape(B, L, C)
        h = jax.nn.gelu(yn * gamma + beta, approximate=False)
        x = h + x
    return x / float(len(params))


if __name__ == "__main__":
    B, L, C = 2, 16, 32          # batch, sequence length, embedding_dim
    LAYER_NUM = 3

    key = jax.random.PRNGKey(0)
    keys = jax.random.split(key, 1 + 2 * LAYER_NUM)
    embedding = jax.random.normal(keys[0], (B, L, C), dtype=jnp.float32)

    params = []
    for i in range(LAYER_NUM):
        # PyTorch layouts: Conv1d weight (C_out, C_in, K), bias (C,), GroupNorm weight/bias (C,)
        w = 0.05 * jax.random.normal(keys[1 + 2 * i], (C, C, 3), dtype=jnp.float32)
        b = 0.01 * jax.random.normal(keys[2 + 2 * i], (C,), dtype=jnp.float32)
        gamma = jnp.ones((C,), dtype=jnp.float32)
        beta = jnp.zeros((C,), dtype=jnp.float32)
        params.append((w, b, gamma, beta))

    out = jax.block_until_ready(cnn_block_forward(embedding, params))
    assert out.shape == (B, L, C)

    # Implementation check: same math as the kernel (bf16 MXU operands, f32 accumulation).
    ref_bf16 = jax.block_until_ready(
        _ref_forward(embedding, params, matmul_dtype=jnp.bfloat16))
    err_b = float(jnp.max(jnp.abs(out - ref_bf16)))
    assert jnp.allclose(out, ref_bf16, atol=2e-3, rtol=2e-3), \
        f"mismatch vs bf16-parity reference: {err_b:e}"

    # Faithfulness check vs the strict f32 (PyTorch-exact) path: bounded by bf16 MXU precision.
    ref_f32 = jax.block_until_ready(
        _ref_forward(embedding, params, matmul_dtype=jnp.float32))
    err_f = float(jnp.max(jnp.abs(out - ref_f32)))
    assert jnp.allclose(out, ref_f32, atol=5e-2, rtol=5e-2), \
        f"mismatch vs f32 reference: {err_f:e}"

    print("KERNEL_OK")
</pallas_src>

<mosaic_0001>
module attributes {stable_mosaic.version = 11 : i64} {
  func.func @_cnn_block_kernel(%arg0: i32, %arg1: memref<2x16x32xf32, #tpu.memory_space<vmem>>, %arg2: memref<9x32x32xbf16, #tpu.memory_space<vmem>>, %arg3: memref<3x1x32xf32, #tpu.memory_space<vmem>>, %arg4: memref<3x1x32xf32, #tpu.memory_space<vmem>>, %arg5: memref<3x1x32xf32, #tpu.memory_space<vmem>>, %arg6: memref<32x32xf32, #tpu.memory_space<vmem>>, %arg7: memref<2x16x32xf32, #tpu.memory_space<vmem>>) attributes {dimension_semantics = [#tpu.dimension_semantics<parallel>], iteration_bounds = array<i64: 1>, scalar_prefetch = 0 : i64, scratch_operands = 0 : i64, tpu.core_type = #tpu.core_type<tc>, window_params = [{transform_indices = @transform_0, window_bounds = array<i64: 2, 16, 32>}, {pipeline_mode = #tpu.pipeline_mode<synchronous>, transform_indices = @transform_1, window_bounds = array<i64: 9, 32, 32>}, {pipeline_mode = #tpu.pipeline_mode<synchronous>, transform_indices = @transform_2, window_bounds = array<i64: 3, 1, 32>}, {pipeline_mode = #tpu.pipeline_mode<synchronous>, transform_indices = @transform_3, window_bounds = array<i64: 3, 1, 32>}, {pipeline_mode = #tpu.pipeline_mode<synchronous>, transform_indices = @transform_4, window_bounds = array<i64: 3, 1, 32>}, {pipeline_mode = #tpu.pipeline_mode<synchronous>, transform_indices = @transform_5, window_bounds = array<i64: 32, 32>}, {transform_indices = @transform_6, window_bounds = array<i64: 2, 16, 32>}]} {
    %c0 = arith.constant 0 : index
    %c0_0 = arith.constant 0 : index
    %0 = vector.load %arg6[%c0, %c0_0] : memref<32x32xf32, #tpu.memory_space<vmem>>, vector<32x32xf32>
    %c0_1 = arith.constant 0 : index
    %c0_2 = arith.constant 0 : index
    %c0_3 = arith.constant 0 : index
    %1 = vector.load %arg1[%c0_1, %c0_2, %c0_3] : memref<2x16x32xf32, #tpu.memory_space<vmem>>, vector<2x16x32xf32>
    %cst = arith.constant 0.000000e+00 : f32
    %2 = vector.broadcast %cst : f32 to vector<2x1x32xf32>
    %3 = arith.truncf %1 : vector<2x16x32xf32> to vector<2x16x32xbf16>
    %4 = vector.shape_cast %3 : vector<2x16x32xbf16> to vector<32x32xbf16>
    %c0_4 = arith.constant 0 : index
    %c0_5 = arith.constant 0 : index
    %c0_6 = arith.constant 0 : index
    %5 = vector.load %arg2[%c0_4, %c0_5, %c0_6] : memref<9x32x32xbf16, #tpu.memory_space<vmem>>, vector<1x32x32xbf16>
    %6 = vector.shape_cast %5 : vector<1x32x32xbf16> to vector<32x32xbf16>
    %cst_7 = arith.constant dense<0.000000e+00> : vector<32x32xf32>
    %7 = tpu.matmul %4, %6, %cst_7 {dimension_numbers = #tpu.dot_dimension_numbers<[1], [0], [0], [1], [0, 0, 1, 1], [], []>} : vector<32x32xbf16>, vector<32x32xbf16>, vector<32x32xf32> -> vector<32x32xf32>
    %c1 = arith.constant 1 : index
    %c0_8 = arith.constant 0 : index
    %c0_9 = arith.constant 0 : index
    %8 = vector.load %arg2[%c1, %c0_8, %c0_9] : memref<9x32x32xbf16, #tpu.memory_space<vmem>>, vector<1x32x32xbf16>
    %9 = vector.shape_cast %8 : vector<1x32x32xbf16> to vector<32x32xbf16>
    %cst_10 = arith.constant dense<0.000000e+00> : vector<32x32xf32>
    %10 = tpu.matmul %4, %9, %cst_10 {dimension_numbers = #tpu.dot_dimension_numbers<[1], [0], [0], [1], [0, 0, 1, 1], [], []>} : vector<32x32xbf16>, vector<32x32xbf16>, vector<32x32xf32> -> vector<32x32xf32>
    %c0_11 = arith.constant 0 : index
    %c0_12 = arith.constant 0 : index
    %c0_13 = arith.constant 0 : index
    %11 = vector.load %arg3[%c0_11, %c0_12, %c0_13] : memref<3x1x32xf32, #tpu.memory_space<vmem>>, vector<1x1x32xf32>
    %12 = vector.shape_cast %11 : vector<1x1x32xf32> to vector<1x32xf32>
    %13 = vector.broadcast %12 : vector<1x32xf32> to vector<32x32xf32>
    %14 = arith.addf %10, %13 : vector<32x32xf32>
    %c2 = arith.constant 2 : index
    %c0_14 = arith.constant 0 : index
    %c0_15 = arith.constant 0 : index
    %15 = vector.load %arg2[%c2, %c0_14, %c0_15] : memref<9x32x32xbf16, #tpu.memory_space<vmem>>, vector<1x32x32xbf16>
    %16 = vector.shape_cast %15 : vector<1x32x32xbf16> to vector<32x32xbf16>
    %cst_16 = arith.constant dense<0.000000e+00> : vector<32x32xf32>
    %17 = tpu.matmul %4, %16, %cst_16 {dimension_numbers = #tpu.dot_dimension_numbers<[1], [0], [0], [1], [0, 0, 1, 1], [], []>} : vector<32x32xbf16>, vector<32x32xbf16>, vector<32x32xf32> -> vector<32x32xf32>
    %18 = vector.shape_cast %7 : vector<32x32xf32> to vector<2x16x32xf32>
    %19 = vector.shape_cast %14 : vector<32x32xf32> to vector<2x16x32xf32>
    %20 = vector.shape_cast %17 : vector<32x32xf32> to vector<2x16x32xf32>
    %21 = vector.extract_strided_slice %18 {offsets = [0, 0, 0], sizes = [2, 15, 32], strides = [1, 1, 1]} : vector<2x16x32xf32> to vector<2x15x32xf32>
    %22 = tpu.concatenate %2, %21 in 1 : vector<2x1x32xf32>, vector<2x15x32xf32> -> vector<2x16x32xf32>
    %23 = arith.addf %19, %22 : vector<2x16x32xf32>
    %24 = vector.extract_strided_slice %20 {offsets = [0, 1, 0], sizes = [2, 15, 32], strides = [1, 1, 1]} : vector<2x16x32xf32> to vector<2x15x32xf32>
    %25 = tpu.concatenate %24, %2 in 1 : vector<2x15x32xf32>, vector<2x1x32xf32> -> vector<2x16x32xf32>
    %26 = arith.addf %23, %25 : vector<2x16x32xf32>
    %cst_17 = arith.constant dense<0.000000e+00> : vector<2x32xf32>
    %27 = vector.multi_reduction <add>, %26, %cst_17 [1] : vector<2x16x32xf32> to vector<2x32xf32>
    %cst_18 = arith.constant dense<0.000000e+00> : vector<2x32xf32>
    %28 = tpu.matmul %27, %0, %cst_18 {dimension_numbers = #tpu.dot_dimension_numbers<[1], [0], [0], [1], [0, 0, 1, 1], [], []>, precision = #tpu.contract_precision<fp32>} : vector<2x32xf32>, vector<32x32xf32>, vector<2x32xf32> -> vector<2x32xf32>
    %29 = vector.shape_cast %28 : vector<2x32xf32> to vector<2x1x32xf32>
    %30 = vector.broadcast %29 : vector<2x1x32xf32> to vector<2x16x32xf32>
    %31 = arith.subf %26, %30 : vector<2x16x32xf32>
    %32 = arith.mulf %31, %31 : vector<2x16x32xf32>
    %cst_19 = arith.constant dense<0.000000e+00> : vector<2x32xf32>
    %33 = vector.multi_reduction <add>, %32, %cst_19 [1] : vector<2x16x32xf32> to vector<2x32xf32>
    %cst_20 = arith.constant dense<0.000000e+00> : vector<2x32xf32>
    %34 = tpu.matmul %33, %0, %cst_20 {dimension_numbers = #tpu.dot_dimension_numbers<[1], [0], [0], [1], [0, 0, 1, 1], [], []>, precision = #tpu.contract_precision<fp32>} : vector<2x32xf32>, vector<32x32xf32>, vector<2x32xf32> -> vector<2x32xf32>
    %c0_21 = arith.constant 0 : index
    %c0_22 = arith.constant 0 : index
    %c0_23 = arith.constant 0 : index
    %35 = vector.load %arg4[%c0_21, %c0_22, %c0_23] : memref<3x1x32xf32, #tpu.memory_space<vmem>>, vector<1x1x32xf32>
    %36 = vector.shape_cast %35 : vector<1x1x32xf32> to vector<1x32xf32>
    %cst_24 = arith.constant 9.99999974E-6 : f32
    %37 = vector.broadcast %cst_24 : f32 to vector<2x32xf32>
    %38 = arith.addf %34, %37 : vector<2x32xf32>
    %39 = math.rsqrt %38 : vector<2x32xf32>
    %40 = vector.broadcast %36 : vector<1x32xf32> to vector<2x32xf32>
    %41 = arith.mulf %40, %39 : vector<2x32xf32>
    %42 = vector.shape_cast %41 : vector<2x32xf32> to vector<2x1x32xf32>
    %43 = vector.broadcast %42 : vector<2x1x32xf32> to vector<2x16x32xf32>
    %44 = arith.mulf %31, %43 : vector<2x16x32xf32>
    %c0_25 = arith.constant 0 : index
    %c0_26 = arith.constant 0 : index
    %c0_27 = arith.constant 0 : index
    %45 = vector.load %arg5[%c0_25, %c0_26, %c0_27] : memref<3x1x32xf32, #tpu.memory_space<vmem>>, vector<1x1x32xf32>
    %46 = vector.shape_cast %45 : vector<1x1x32xf32> to vector<1x32xf32>
    %47 = vector.shape_cast %46 : vector<1x32xf32> to vector<1x1x32xf32>
    %48 = vector.broadcast %47 : vector<1x1x32xf32> to vector<2x16x32xf32>
    %49 = arith.addf %44, %48 : vector<2x16x32xf32>
    %cst_28 = arith.constant 5.000000e-01 : f32
    %50 = vector.broadcast %cst_28 : f32 to vector<2x16x32xf32>
    %51 = arith.mulf %50, %49 : vector<2x16x32xf32>
    %cst_29 = arith.constant 0.707106769 : f32
    %52 = vector.broadcast %cst_29 : f32 to vector<2x16x32xf32>
    %53 = arith.mulf %49, %52 : vector<2x16x32xf32>
    %cst_30 = arith.constant 0.000000e+00 : f32
    %54 = vector.broadcast %cst_30 : f32 to vector<2x16x32xf32>
    %55 = arith.cmpf oge, %53, %54 : vector<2x16x32xf32>
    %cst_31 = arith.constant 1.000000e+00 : f32
    %cst_32 = arith.constant -1.000000e+00 : f32
    %56 = vector.broadcast %cst_31 : f32 to vector<2x16x32xf32>
    %57 = vector.broadcast %cst_32 : f32 to vector<2x16x32xf32>
    %58 = arith.select %55, %56, %57 : vector<2x16x32xi1>, vector<2x16x32xf32>
    %59 = math.absf %53 : vector<2x16x32xf32>
    %cst_33 = arith.constant 0.327591091 : f32
    %60 = vector.broadcast %cst_33 : f32 to vector<2x16x32xf32>
    %61 = arith.mulf %60, %59 : vector<2x16x32xf32>
    %cst_34 = arith.constant 1.000000e+00 : f32
    %62 = vector.broadcast %cst_34 : f32 to vector<2x16x32xf32>
    %63 = arith.addf %62, %61 : vector<2x16x32xf32>
    %cst_35 = arith.constant 1.000000e+00 : f32
    %64 = vector.broadcast %cst_35 : f32 to vector<2x16x32xf32>
    %65 = arith.divf %64, %63 : vector<2x16x32xf32>
    %cst_36 = arith.constant 1.06140542 : f32
    %66 = vector.broadcast %cst_36 : f32 to vector<2x16x32xf32>
    %67 = arith.mulf %66, %65 : vector<2x16x32xf32>
    %cst_37 = arith.constant -1.45315206 : f32
    %68 = vector.broadcast %cst_37 : f32 to vector<2x16x32xf32>
    %69 = arith.addf %67, %68 : vector<2x16x32xf32>
    %70 = arith.mulf %69, %65 : vector<2x16x32xf32>
    %cst_38 = arith.constant 1.42141378 : f32
    %71 = vector.broadcast %cst_38 : f32 to vector<2x16x32xf32>
    %72 = arith.addf %70, %71 : vector<2x16x32xf32>
    %73 = arith.mulf %72, %65 : vector<2x16x32xf32>
    %cst_39 = arith.constant -0.284496725 : f32
    %74 = vector.broadcast %cst_39 : f32 to vector<2x16x32xf32>
    %75 = arith.addf %73, %74 : vector<2x16x32xf32>
    %76 = arith.mulf %75, %65 : vector<2x16x32xf32>
    %cst_40 = arith.constant 0.254829586 : f32
    %77 = vector.broadcast %cst_40 : f32 to vector<2x16x32xf32>
    %78 = arith.addf %76, %77 : vector<2x16x32xf32>
    %79 = arith.mulf %78, %65 : vector<2x16x32xf32>
    %cst_41 = arith.constant 0.000000e+00 : f32
    %80 = vector.broadcast %cst_41 : f32 to vector<2x16x32xf32>
    %81 = arith.subf %80, %59 : vector<2x16x32xf32>
    %82 = arith.mulf %81, %59 : vector<2x16x32xf32>
    %83 = math.exp %82 : vector<2x16x32xf32>
    %84 = arith.mulf %79, %83 : vector<2x16x32xf32>
    %cst_42 = arith.constant 1.000000e+00 : f32
    %85 = vector.broadcast %cst_42 : f32 to vector<2x16x32xf32>
    %86 = arith.subf %85, %84 : vector<2x16x32xf32>
    %87 = arith.mulf %58, %86 : vector<2x16x32xf32>
    %cst_43 = arith.constant 1.000000e+00 : f32
    %88 = vector.broadcast %cst_43 : f32 to vector<2x16x32xf32>
    %89 = arith.addf %88, %87 : vector<2x16x32xf32>
    %90 = arith.mulf %51, %89 : vector<2x16x32xf32>
    %91 = arith.addf %90, %1 : vector<2x16x32xf32>
    %92 = arith.truncf %91 : vector<2x16x32xf32> to vector<2x16x32xbf16>
    %93 = vector.shape_cast %92 : vector<2x16x32xbf16> to vector<32x32xbf16>
    %c3 = arith.constant 3 : index
    %c0_44 = arith.constant 0 : index
    %c0_45 = arith.constant 0 : index
    %94 = vector.load %arg2[%c3, %c0_44, %c0_45] : memref<9x32x32xbf16, #tpu.memory_space<vmem>>, vector<1x32x32xbf16>
    %95 = vector.shape_cast %94 : vector<1x32x32xbf16> to vector<32x32xbf16>
    %cst_46 = arith.constant dense<0.000000e+00> : vector<32x32xf32>
    %96 = tpu.matmul %93, %95, %cst_46 {dimension_numbers = #tpu.dot_dimension_numbers<[1], [0], [0], [1], [0, 0, 1, 1], [], []>} : vector<32x32xbf16>, vector<32x32xbf16>, vector<32x32xf32> -> vector<32x32xf32>
    %c4 = arith.constant 4 : index
    %c0_47 = arith.constant 0 : index
    %c0_48 = arith.constant 0 : index
    %97 = vector.load %arg2[%c4, %c0_47, %c0_48] : memref<9x32x32xbf16, #tpu.memory_space<vmem>>, vector<1x32x32xbf16>
    %98 = vector.shape_cast %97 : vector<1x32x32xbf16> to vector<32x32xbf16>
    %cst_49 = arith.constant dense<0.000000e+00> : vector<32x32xf32>
    %99 = tpu.matmul %93, %98, %cst_49 {dimension_numbers = #tpu.dot_dimension_numbers<[1], [0], [0], [1], [0, 0, 1, 1], [], []>} : vector<32x32xbf16>, vector<32x32xbf16>, vector<32x32xf32> -> vector<32x32xf32>
    %c1_50 = arith.constant 1 : index
    %c0_51 = arith.constant 0 : index
    %c0_52 = arith.constant 0 : index
    %100 = vector.load %arg3[%c1_50, %c0_51, %c0_52] : memref<3x1x32xf32, #tpu.memory_space<vmem>>, vector<1x1x32xf32>
    %101 = vector.shape_cast %100 : vector<1x1x32xf32> to vector<1x32xf32>
    %102 = vector.broadcast %101 : vector<1x32xf32> to vector<32x32xf32>
    %103 = arith.addf %99, %102 : vector<32x32xf32>
    %c5 = arith.constant 5 : index
    %c0_53 = arith.constant 0 : index
    %c0_54 = arith.constant 0 : index
    %104 = vector.load %arg2[%c5, %c0_53, %c0_54] : memref<9x32x32xbf16, #tpu.memory_space<vmem>>, vector<1x32x32xbf16>
    %105 = vector.shape_cast %104 : vector<1x32x32xbf16> to vector<32x32xbf16>
    %cst_55 = arith.constant dense<0.000000e+00> : vector<32x32xf32>
    %106 = tpu.matmul %93, %105, %cst_55 {dimension_numbers = #tpu.dot_dimension_numbers<[1], [0], [0], [1], [0, 0, 1, 1], [], []>} : vector<32x32xbf16>, vector<32x32xbf16>, vector<32x32xf32> -> vector<32x32xf32>
    %107 = vector.shape_cast %96 : vector<32x32xf32> to vector<2x16x32xf32>
    %108 = vector.shape_cast %103 : vector<32x32xf32> to vector<2x16x32xf32>
    %109 = vector.shape_cast %106 : vector<32x32xf32> to vector<2x16x32xf32>
    %110 = vector.extract_strided_slice %107 {offsets = [0, 0, 0], sizes = [2, 15, 32], strides = [1, 1, 1]} : vector<2x16x32xf32> to vector<2x15x32xf32>
    %111 = tpu.concatenate %2, %110 in 1 : vector<2x1x32xf32>, vector<2x15x32xf32> -> vector<2x16x32xf32>
    %112 = arith.addf %108, %111 : vector<2x16x32xf32>
    %113 = vector.extract_strided_slice %109 {offsets = [0, 1, 0], sizes = [2, 15, 32], strides = [1, 1, 1]} : vector<2x16x32xf32> to vector<2x15x32xf32>
    %114 = tpu.concatenate %113, %2 in 1 : vector<2x15x32xf32>, vector<2x1x32xf32> -> vector<2x16x32xf32>
    %115 = arith.addf %112, %114 : vector<2x16x32xf32>
    %cst_56 = arith.constant dense<0.000000e+00> : vector<2x32xf32>
    %116 = vector.multi_reduction <add>, %115, %cst_56 [1] : vector<2x16x32xf32> to vector<2x32xf32>
    %cst_57 = arith.constant dense<0.000000e+00> : vector<2x32xf32>
    %117 = tpu.matmul %116, %0, %cst_57 {dimension_numbers = #tpu.dot_dimension_numbers<[1], [0], [0], [1], [0, 0, 1, 1], [], []>, precision = #tpu.contract_precision<fp32>} : vector<2x32xf32>, vector<32x32xf32>, vector<2x32xf32> -> vector<2x32xf32>
    %118 = vector.shape_cast %117 : vector<2x32xf32> to vector<2x1x32xf32>
    %119 = vector.broadcast %118 : vector<2x1x32xf32> to vector<2x16x32xf32>
    %120 = arith.subf %115, %119 : vector<2x16x32xf32>
    %121 = arith.mulf %120, %120 : vector<2x16x32xf32>
    %cst_58 = arith.constant dense<0.000000e+00> : vector<2x32xf32>
    %122 = vector.multi_reduction <add>, %121, %cst_58 [1] : vector<2x16x32xf32> to vector<2x32xf32>
    %cst_59 = arith.constant dense<0.000000e+00> : vector<2x32xf32>
    %123 = tpu.matmul %122, %0, %cst_59 {dimension_numbers = #tpu.dot_dimension_numbers<[1], [0], [0], [1], [0, 0, 1, 1], [], []>, precision = #tpu.contract_precision<fp32>} : vector<2x32xf32>, vector<32x32xf32>, vector<2x32xf32> -> vector<2x32xf32>
    %c1_60 = arith.constant 1 : index
    %c0_61 = arith.constant 0 : index
    %c0_62 = arith.constant 0 : index
    %124 = vector.load %arg4[%c1_60, %c0_61, %c0_62] : memref<3x1x32xf32, #tpu.memory_space<vmem>>, vector<1x1x32xf32>
    %125 = vector.shape_cast %124 : vector<1x1x32xf32> to vector<1x32xf32>
    %cst_63 = arith.constant 9.99999974E-6 : f32
    %126 = vector.broadcast %cst_63 : f32 to vector<2x32xf32>
    %127 = arith.addf %123, %126 : vector<2x32xf32>
    %128 = math.rsqrt %127 : vector<2x32xf32>
    %129 = vector.broadcast %125 : vector<1x32xf32> to vector<2x32xf32>
    %130 = arith.mulf %129, %128 : vector<2x32xf32>
    %131 = vector.shape_cast %130 : vector<2x32xf32> to vector<2x1x32xf32>
    %132 = vector.broadcast %131 : vector<2x1x32xf32> to vector<2x16x32xf32>
    %133 = arith.mulf %120, %132 : vector<2x16x32xf32>
    %c1_64 = arith.constant 1 : index
    %c0_65 = arith.constant 0 : index
    %c0_66 = arith.constant 0 : index
    %134 = vector.load %arg5[%c1_64, %c0_65, %c0_66] : memref<3x1x32xf32, #tpu.memory_space<vmem>>, vector<1x1x32xf32>
    %135 = vector.shape_cast %134 : vector<1x1x32xf32> to vector<1x32xf32>
    %136 = vector.shape_cast %135 : vector<1x32xf32> to vector<1x1x32xf32>
    %137 = vector.broadcast %136 : vector<1x1x32xf32> to vector<2x16x32xf32>
    %138 = arith.addf %133, %137 : vector<2x16x32xf32>
    %cst_67 = arith.constant 5.000000e-01 : f32
    %139 = vector.broadcast %cst_67 : f32 to vector<2x16x32xf32>
    %140 = arith.mulf %139, %138 : vector<2x16x32xf32>
    %cst_68 = arith.constant 0.707106769 : f32
    %141 = vector.broadcast %cst_68 : f32 to vector<2x16x32xf32>
    %142 = arith.mulf %138, %141 : vector<2x16x32xf32>
    %cst_69 = arith.constant 0.000000e+00 : f32
    %143 = vector.broadcast %cst_69 : f32 to vector<2x16x32xf32>
    %144 = arith.cmpf oge, %142, %143 : vector<2x16x32xf32>
    %cst_70 = arith.constant 1.000000e+00 : f32
    %cst_71 = arith.constant -1.000000e+00 : f32
    %145 = vector.broadcast %cst_70 : f32 to vector<2x16x32xf32>
    %146 = vector.broadcast %cst_71 : f32 to vector<2x16x32xf32>
    %147 = arith.select %144, %145, %146 : vector<2x16x32xi1>, vector<2x16x32xf32>
    %148 = math.absf %142 : vector<2x16x32xf32>
    %cst_72 = arith.constant 0.327591091 : f32
    %149 = vector.broadcast %cst_72 : f32 to vector<2x16x32xf32>
    %150 = arith.mulf %149, %148 : vector<2x16x32xf32>
    %cst_73 = arith.constant 1.000000e+00 : f32
    %151 = vector.broadcast %cst_73 : f32 to vector<2x16x32xf32>
    %152 = arith.addf %151, %150 : vector<2x16x32xf32>
    %cst_74 = arith.constant 1.000000e+00 : f32
    %153 = vector.broadcast %cst_74 : f32 to vector<2x16x32xf32>
    %154 = arith.divf %153, %152 : vector<2x16x32xf32>
    %cst_75 = arith.constant 1.06140542 : f32
    %155 = vector.broadcast %cst_75 : f32 to vector<2x16x32xf32>
    %156 = arith.mulf %155, %154 : vector<2x16x32xf32>
    %cst_76 = arith.constant -1.45315206 : f32
    %157 = vector.broadcast %cst_76 : f32 to vector<2x16x32xf32>
    %158 = arith.addf %156, %157 : vector<2x16x32xf32>
    %159 = arith.mulf %158, %154 : vector<2x16x32xf32>
    %cst_77 = arith.constant 1.42141378 : f32
    %160 = vector.broadcast %cst_77 : f32 to vector<2x16x32xf32>
    %161 = arith.addf %159, %160 : vector<2x16x32xf32>
    %162 = arith.mulf %161, %154 : vector<2x16x32xf32>
    %cst_78 = arith.constant -0.284496725 : f32
    %163 = vector.broadcast %cst_78 : f32 to vector<2x16x32xf32>
    %164 = arith.addf %162, %163 : vector<2x16x32xf32>
    %165 = arith.mulf %164, %154 : vector<2x16x32xf32>
    %cst_79 = arith.constant 0.254829586 : f32
    %166 = vector.broadcast %cst_79 : f32 to vector<2x16x32xf32>
    %167 = arith.addf %165, %166 : vector<2x16x32xf32>
    %168 = arith.mulf %167, %154 : vector<2x16x32xf32>
    %cst_80 = arith.constant 0.000000e+00 : f32
    %169 = vector.broadcast %cst_80 : f32 to vector<2x16x32xf32>
    %170 = arith.subf %169, %148 : vector<2x16x32xf32>
    %171 = arith.mulf %170, %148 : vector<2x16x32xf32>
    %172 = math.exp %171 : vector<2x16x32xf32>
    %173 = arith.mulf %168, %172 : vector<2x16x32xf32>
    %cst_81 = arith.constant 1.000000e+00 : f32
    %174 = vector.broadcast %cst_81 : f32 to vector<2x16x32xf32>
    %175 = arith.subf %174, %173 : vector<2x16x32xf32>
    %176 = arith.mulf %147, %175 : vector<2x16x32xf32>
    %cst_82 = arith.constant 1.000000e+00 : f32
    %177 = vector.broadcast %cst_82 : f32 to vector<2x16x32xf32>
    %178 = arith.addf %177, %176 : vector<2x16x32xf32>
    %179 = arith.mulf %140, %178 : vector<2x16x32xf32>
    %180 = arith.addf %179, %91 : vector<2x16x32xf32>
    %181 = arith.truncf %180 : vector<2x16x32xf32> to vector<2x16x32xbf16>
    %182 = vector.shape_cast %181 : vector<2x16x32xbf16> to vector<32x32xbf16>
    %c6 = arith.constant 6 : index
    %c0_83 = arith.constant 0 : index
    %c0_84 = arith.constant 0 : index
    %183 = vector.load %arg2[%c6, %c0_83, %c0_84] : memref<9x32x32xbf16, #tpu.memory_space<vmem>>, vector<1x32x32xbf16>
    %184 = vector.shape_cast %183 : vector<1x32x32xbf16> to vector<32x32xbf16>
    %cst_85 = arith.constant dense<0.000000e+00> : vector<32x32xf32>
    %185 = tpu.matmul %182, %184, %cst_85 {dimension_numbers = #tpu.dot_dimension_numbers<[1], [0], [0], [1], [0, 0, 1, 1], [], []>} : vector<32x32xbf16>, vector<32x32xbf16>, vector<32x32xf32> -> vector<32x32xf32>
    %c7 = arith.constant 7 : index
    %c0_86 = arith.constant 0 : index
    %c0_87 = arith.constant 0 : index
    %186 = vector.load %arg2[%c7, %c0_86, %c0_87] : memref<9x32x32xbf16, #tpu.memory_space<vmem>>, vector<1x32x32xbf16>
    %187 = vector.shape_cast %186 : vector<1x32x32xbf16> to vector<32x32xbf16>
    %cst_88 = arith.constant dense<0.000000e+00> : vector<32x32xf32>
    %188 = tpu.matmul %182, %187, %cst_88 {dimension_numbers = #tpu.dot_dimension_numbers<[1], [0], [0], [1], [0, 0, 1, 1], [], []>} : vector<32x32xbf16>, vector<32x32xbf16>, vector<32x32xf32> -> vector<32x32xf32>
    %c2_89 = arith.constant 2 : index
    %c0_90 = arith.constant 0 : index
    %c0_91 = arith.constant 0 : index
    %189 = vector.load %arg3[%c2_89, %c0_90, %c0_91] : memref<3x1x32xf32, #tpu.memory_space<vmem>>, vector<1x1x32xf32>
    %190 = vector.shape_cast %189 : vector<1x1x32xf32> to vector<1x32xf32>
    %191 = vector.broadcast %190 : vector<1x32xf32> to vector<32x32xf32>
    %192 = arith.addf %188, %191 : vector<32x32xf32>
    %c8 = arith.constant 8 : index
    %c0_92 = arith.constant 0 : index
    %c0_93 = arith.constant 0 : index
    %193 = vector.load %arg2[%c8, %c0_92, %c0_93] : memref<9x32x32xbf16, #tpu.memory_space<vmem>>, vector<1x32x32xbf16>
    %194 = vector.shape_cast %193 : vector<1x32x32xbf16> to vector<32x32xbf16>
    %cst_94 = arith.constant dense<0.000000e+00> : vector<32x32xf32>
    %195 = tpu.matmul %182, %194, %cst_94 {dimension_numbers = #tpu.dot_dimension_numbers<[1], [0], [0], [1], [0, 0, 1, 1], [], []>} : vector<32x32xbf16>, vector<32x32xbf16>, vector<32x32xf32> -> vector<32x32xf32>
    %196 = vector.shape_cast %185 : vector<32x32xf32> to vector<2x16x32xf32>
    %197 = vector.shape_cast %192 : vector<32x32xf32> to vector<2x16x32xf32>
    %198 = vector.shape_cast %195 : vector<32x32xf32> to vector<2x16x32xf32>
    %199 = vector.extract_strided_slice %196 {offsets = [0, 0, 0], sizes = [2, 15, 32], strides = [1, 1, 1]} : vector<2x16x32xf32> to vector<2x15x32xf32>
    %200 = tpu.concatenate %2, %199 in 1 : vector<2x1x32xf32>, vector<2x15x32xf32> -> vector<2x16x32xf32>
    %201 = arith.addf %197, %200 : vector<2x16x32xf32>
    %202 = vector.extract_strided_slice %198 {offsets = [0, 1, 0], sizes = [2, 15, 32], strides = [1, 1, 1]} : vector<2x16x32xf32> to vector<2x15x32xf32>
    %203 = tpu.concatenate %202, %2 in 1 : vector<2x15x32xf32>, vector<2x1x32xf32> -> vector<2x16x32xf32>
    %204 = arith.addf %201, %203 : vector<2x16x32xf32>
    %cst_95 = arith.constant dense<0.000000e+00> : vector<2x32xf32>
    %205 = vector.multi_reduction <add>, %204, %cst_95 [1] : vector<2x16x32xf32> to vector<2x32xf32>
    %cst_96 = arith.constant dense<0.000000e+00> : vector<2x32xf32>
    %206 = tpu.matmul %205, %0, %cst_96 {dimension_numbers = #tpu.dot_dimension_numbers<[1], [0], [0], [1], [0, 0, 1, 1], [], []>, precision = #tpu.contract_precision<fp32>} : vector<2x32xf32>, vector<32x32xf32>, vector<2x32xf32> -> vector<2x32xf32>
    %207 = vector.shape_cast %206 : vector<2x32xf32> to vector<2x1x32xf32>
    %208 = vector.broadcast %207 : vector<2x1x32xf32> to vector<2x16x32xf32>
    %209 = arith.subf %204, %208 : vector<2x16x32xf32>
    %210 = arith.mulf %209, %209 : vector<2x16x32xf32>
    %cst_97 = arith.constant dense<0.000000e+00> : vector<2x32xf32>
    %211 = vector.multi_reduction <add>, %210, %cst_97 [1] : vector<2x16x32xf32> to vector<2x32xf32>
    %cst_98 = arith.constant dense<0.000000e+00> : vector<2x32xf32>
    %212 = tpu.matmul %211, %0, %cst_98 {dimension_numbers = #tpu.dot_dimension_numbers<[1], [0], [0], [1], [0, 0, 1, 1], [], []>, precision = #tpu.contract_precision<fp32>} : vector<2x32xf32>, vector<32x32xf32>, vector<2x32xf32> -> vector<2x32xf32>
    %c2_99 = arith.constant 2 : index
    %c0_100 = arith.constant 0 : index
    %c0_101 = arith.constant 0 : index
    %213 = vector.load %arg4[%c2_99, %c0_100, %c0_101] : memref<3x1x32xf32, #tpu.memory_space<vmem>>, vector<1x1x32xf32>
    %214 = vector.shape_cast %213 : vector<1x1x32xf32> to vector<1x32xf32>
    %cst_102 = arith.constant 9.99999974E-6 : f32
    %215 = vector.broadcast %cst_102 : f32 to vector<2x32xf32>
    %216 = arith.addf %212, %215 : vector<2x32xf32>
    %217 = math.rsqrt %216 : vector<2x32xf32>
    %218 = vector.broadcast %214 : vector<1x32xf32> to vector<2x32xf32>
    %219 = arith.mulf %218, %217 : vector<2x32xf32>
    %220 = vector.shape_cast %219 : vector<2x32xf32> to vector<2x1x32xf32>
    %221 = vector.broadcast %220 : vector<2x1x32xf32> to vector<2x16x32xf32>
    %222 = arith.mulf %209, %221 : vector<2x16x32xf32>
    %c2_103 = arith.constant 2 : index
    %c0_104 = arith.constant 0 : index
    %c0_105 = arith.constant 0 : index
    %223 = vector.load %arg5[%c2_103, %c0_104, %c0_105] : memref<3x1x32xf32, #tpu.memory_space<vmem>>, vector<1x1x32xf32>
    %224 = vector.shape_cast %223 : vector<1x1x32xf32> to vector<1x32xf32>
    %225 = vector.shape_cast %224 : vector<1x32xf32> to vector<1x1x32xf32>
    %226 = vector.broadcast %225 : vector<1x1x32xf32> to vector<2x16x32xf32>
    %227 = arith.addf %222, %226 : vector<2x16x32xf32>
    %cst_106 = arith.constant 5.000000e-01 : f32
    %228 = vector.broadcast %cst_106 : f32 to vector<2x16x32xf32>
    %229 = arith.mulf %228, %227 : vector<2x16x32xf32>
    %cst_107 = arith.constant 0.707106769 : f32
    %230 = vector.broadcast %cst_107 : f32 to vector<2x16x32xf32>
    %231 = arith.mulf %227, %230 : vector<2x16x32xf32>
    %cst_108 = arith.constant 0.000000e+00 : f32
    %232 = vector.broadcast %cst_108 : f32 to vector<2x16x32xf32>
    %233 = arith.cmpf oge, %231, %232 : vector<2x16x32xf32>
    %cst_109 = arith.constant 1.000000e+00 : f32
    %cst_110 = arith.constant -1.000000e+00 : f32
    %234 = vector.broadcast %cst_109 : f32 to vector<2x16x32xf32>
    %235 = vector.broadcast %cst_110 : f32 to vector<2x16x32xf32>
    %236 = arith.select %233, %234, %235 : vector<2x16x32xi1>, vector<2x16x32xf32>
    %237 = math.absf %231 : vector<2x16x32xf32>
    %cst_111 = arith.constant 0.327591091 : f32
    %238 = vector.broadcast %cst_111 : f32 to vector<2x16x32xf32>
    %239 = arith.mulf %238, %237 : vector<2x16x32xf32>
    %cst_112 = arith.constant 1.000000e+00 : f32
    %240 = vector.broadcast %cst_112 : f32 to vector<2x16x32xf32>
    %241 = arith.addf %240, %239 : vector<2x16x32xf32>
    %cst_113 = arith.constant 1.000000e+00 : f32
    %242 = vector.broadcast %cst_113 : f32 to vector<2x16x32xf32>
    %243 = arith.divf %242, %241 : vector<2x16x32xf32>
    %cst_114 = arith.constant 1.06140542 : f32
    %244 = vector.broadcast %cst_114 : f32 to vector<2x16x32xf32>
    %245 = arith.mulf %244, %243 : vector<2x16x32xf32>
    %cst_115 = arith.constant -1.45315206 : f32
    %246 = vector.broadcast %cst_115 : f32 to vector<2x16x32xf32>
    %247 = arith.addf %245, %246 : vector<2x16x32xf32>
    %248 = arith.mulf %247, %243 : vector<2x16x32xf32>
    %cst_116 = arith.constant 1.42141378 : f32
    %249 = vector.broadcast %cst_116 : f32 to vector<2x16x32xf32>
    %250 = arith.addf %248, %249 : vector<2x16x32xf32>
    %251 = arith.mulf %250, %243 : vector<2x16x32xf32>
    %cst_117 = arith.constant -0.284496725 : f32
    %252 = vector.broadcast %cst_117 : f32 to vector<2x16x32xf32>
    %253 = arith.addf %251, %252 : vector<2x16x32xf32>
    %254 = arith.mulf %253, %243 : vector<2x16x32xf32>
    %cst_118 = arith.constant 0.254829586 : f32
    %255 = vector.broadcast %cst_118 : f32 to vector<2x16x32xf32>
    %256 = arith.addf %254, %255 : vector<2x16x32xf32>
    %257 = arith.mulf %256, %243 : vector<2x16x32xf32>
    %cst_119 = arith.constant 0.000000e+00 : f32
    %258 = vector.broadcast %cst_119 : f32 to vector<2x16x32xf32>
    %259 = arith.subf %258, %237 : vector<2x16x32xf32>
    %260 = arith.mulf %259, %237 : vector<2x16x32xf32>
    %261 = math.exp %260 : vector<2x16x32xf32>
    %262 = arith.mulf %257, %261 : vector<2x16x32xf32>
    %cst_120 = arith.constant 1.000000e+00 : f32
    %263 = vector.broadcast %cst_120 : f32 to vector<2x16x32xf32>
    %264 = arith.subf %263, %262 : vector<2x16x32xf32>
    %265 = arith.mulf %236, %264 : vector<2x16x32xf32>
    %cst_121 = arith.constant 1.000000e+00 : f32
    %266 = vector.broadcast %cst_121 : f32 to vector<2x16x32xf32>
    %267 = arith.addf %266, %265 : vector<2x16x32xf32>
    %268 = arith.mulf %229, %267 : vector<2x16x32xf32>
    %269 = arith.addf %268, %180 : vector<2x16x32xf32>
    %cst_122 = arith.constant 0.333333343 : f32
    %270 = vector.broadcast %cst_122 : f32 to vector<2x16x32xf32>
    %271 = arith.mulf %269, %270 : vector<2x16x32xf32>
    %c0_123 = arith.constant 0 : index
    %c0_124 = arith.constant 0 : index
    %c0_125 = arith.constant 0 : index
    %272 = vector.load %arg7[%c0_123, %c0_124, %c0_125] : memref<2x16x32xf32, #tpu.memory_space<vmem>>, vector<2x16x32xf32>
    tpu.vector_store %arg7[%c0_123, %c0_124, %c0_125], %271 {strides = array<i32>} : memref<2x16x32xf32, #tpu.memory_space<vmem>>, vector<2x16x32xf32>,
    return
  }
  func.func @transform_0(%arg0: i32) -> (i32, i32, i32) {
    %c0_i32 = arith.constant 0 : i32
    %c0_i32_0 = arith.constant 0 : i32
    %c0_i32_1 = arith.constant 0 : i32
    return %arg0, %c0_i32, %c0_i32_0 : i32, i32, i32
  }
  func.func @transform_1(%arg0: i32) -> (i32, i32, i32) {
    %c0_i32 = arith.constant 0 : i32
    %c0_i32_0 = arith.constant 0 : i32
    %c0_i32_1 = arith.constant 0 : i32
    %c0_i32_2 = arith.constant 0 : i32
    return %c0_i32, %c0_i32_0, %c0_i32_1 : i32, i32, i32
  }
  func.func @transform_2(%arg0: i32) -> (i32, i32, i32) {
    %c0_i32 = arith.constant 0 : i32
    %c0_i32_0 = arith.constant 0 : i32
    %c0_i32_1 = arith.constant 0 : i32
    %c0_i32_2 = arith.constant 0 : i32
    return %c0_i32, %c0_i32_0, %c0_i32_1 : i32, i32, i32
  }
  func.func @transform_3(%arg0: i32) -> (i32, i32, i32) {
    %c0_i32 = arith.constant 0 : i32
    %c0_i32_0 = arith.constant 0 : i32
    %c0_i32_1 = arith.constant 0 : i32
    %c0_i32_2 = arith.constant 0 : i32
    return %c0_i32, %c0_i32_0, %c0_i32_1 : i32, i32, i32
  }
  func.func @transform_4(%arg0: i32) -> (i32, i32, i32) {
    %c0_i32 = arith.constant 0 : i32
    %c0_i32_0 = arith.constant 0 : i32
    %c0_i32_1 = arith.constant 0 : i32
    %c0_i32_2 = arith.constant 0 : i32
    return %c0_i32, %c0_i32_0, %c0_i32_1 : i32, i32, i32
  }
  func.func @transform_5(%arg0: i32) -> (i32, i32) {
    %c0_i32 = arith.constant 0 : i32
    %c0_i32_0 = arith.constant 0 : i32
    %c0_i32_1 = arith.constant 0 : i32
    return %c0_i32, %c0_i32_0 : i32, i32
  }
  func.func @transform_6(%arg0: i32) -> (i32, i32, i32) {
    %c0_i32 = arith.constant 0 : i32
    %c0_i32_0 = arith.constant 0 : i32
    %c0_i32_1 = arith.constant 0 : i32
    return %arg0, %c0_i32, %c0_i32_0 : i32, i32, i32
  }
}

</mosaic_0001>

<bundles_post_ra>
// kernel: tpu_custom_call.1
= control target key start
LH: loop header
LB: loop body
LE: loop exit
PB: predicated region body
PF: predicated region fallthrough
CT: control target
= control target key end

     0   :  { %11 = vsyncpa [#allocation3], 0  ;;  %s3598_s0 = inlined_call_operand.hbm [shape: f32[2,16,32], index: 0, kind: input, shape index: {}]   ;;  %s3599_s1 = inlined_call_operand.hbm [shape: bf16[9,32,32], index: 1, kind: input, shape index: {}]   ;;  %s3600_s2 = inlined_call_operand.hbm [shape: f32[3,1,32], index: 2, kind: input, shape index: {}]   ;;  %s3601_s3 = inlined_call_operand.hbm [shape: f32[3,1,32], index: 3, kind: input, shape index: {}]   ;;  %s3602_s4 = inlined_call_operand.vmem [shape: f32[3,1,32], index: 4, kind: input, shape index: {}]   ;;  %s3603_s5 = inlined_call_operand.hbm [shape: f32[32,32], index: 5, kind: input, shape index: {}]   ;;  %s3604_s6 = inlined_call_operand.hbm [shape: f32[2,16,32], index: 6, kind: output, shape index: {}]  }
   0x1   :  { %12 = vsyncpa [#allocation6], 0 }
   0x2   :  { %13 = vsyncpa [#allocation9], 0  ;;  %s32_s23 = sshll.u32 %s3599_s1, 4  ;;  %s33_s23 = int_to_ptr.hbm [resolvable:$true] %s32_s23 }
   0x3   :  { %14 = vsyncpa [#allocation4], 0  ;;  %s2884_s24 = smov [#allocation5]   ;;  %s2885_s26 = smov 64  }
   0x4   :  { %s34_s25 = sshll.u32 %s2884_s24, 4  ;;  %s2886_s27 = smov 4   ;;  %s35_s25 = int_to_ptr.vmem [resolvable:$true] %s34_s25 }
   0x5   :  { %40 = dma.hbm_to_vmem [thread:$0]  %s33_s23, 2304, %s35_s25, [#allocation6], %s2885_s26, %s2885_s26, %s2886_s27  }
   0x6   :  { %s58_s30 = sshll.u32 %s3601_s3, 4  ;;  %s2887_s7 = smov [#allocation8]   ;;  %s59_s30 = int_to_ptr.hbm [resolvable:$true] %s58_s30 }
   0x7   :  { %s60_s8 = sshll.u32 %s2887_s7, 4  ;;  %s19_s11 = sshll.u32 %s3598_s0, 4  ;;  %s61_s8 = int_to_ptr.vmem [resolvable:$true] %s60_s8  ;;  %s20_s11 = int_to_ptr.hbm [resolvable:$true] %s19_s11 }
   0x8   :  { %s2888_s1 = smov 16   ;;  %s2889_s12 = smov 1  }
   0x9   :  { %66 = dma.hbm_to_vmem [thread:$0]  %s59_s30, 48, %s61_s8, [#allocation9], %s2888_s1, %s2888_s1, %s2889_s12  }
   0xa   :  { %s2890_s13 = smov [#allocation2]   ;;  %s45_s17 = sshll.u32 %s3600_s2, 4  ;;  %s46_s17 = int_to_ptr.hbm [resolvable:$true] %s45_s17 }
   0xb   :  { %s21_s14 = sshll.u32 %s2890_s13, 4  ;;  %s2891_s3 = smov 128   ;;  %s22_s14 = int_to_ptr.vmem [resolvable:$true] %s21_s14 }
   0xc   :  { %s2892_s18 = smov 8   ;;  %s2893_s0 = smov [#allocation7]  }
   0xd   :  { %27 = dma.hbm_to_vmem [thread:$0]  %s20_s11, 512, %s22_s14, [#allocation3], %s2891_s3, %s2891_s3, %s2892_s18  }
   0xe   :  { %s47_s19 = sshll.u32 %s2893_s0, 4  ;;  %s73_s22 = sshll.u32 %s3603_s5, 4  ;;  %s48_s19 = int_to_ptr.vmem [resolvable:$true] %s47_s19  ;;  %s74_s22 = int_to_ptr.hbm [resolvable:$true] %s73_s22 }
   0xf   :  { %53 = dma.hbm_to_vmem [thread:$0]  %s46_s17, 48, %s48_s19, [#allocation6], %s2888_s1, %s2888_s1, %s2889_s12  }
  0x10   :  { %s2894_s23 = smov [#allocation10]  }
  0x11   :  { %s75_s24 = sshll.u32 %s2894_s23, 4  ;;  %s76_s24 = int_to_ptr.vmem [resolvable:$true] %s75_s24 }
  0x12   :  { %81 = dma.hbm_to_vmem [thread:$0]  %s74_s22, 512, %s76_s24, [#allocation9], %s2891_s3, %s2891_s3, %s2892_s18  }
  0x13   :  { %2876 = dma.done.wait [#allocation3], 512  }
  0x14   :  { %2877 = vsyncadd [#allocation3], 4294966784 }
  0x15   :  { %2878 = dma.done.wait [#allocation6], 2352  }
  0x16   :  { %2879 = vsyncadd [#allocation6], 4294964944 }
  0x17   :  { %2880 = dma.done.wait [#allocation9], 560  }
  0x18   :  { %2881 = vsyncadd [#allocation9], 4294966736  ;;  %v2639_v0 = vld [vmem:[#allocation5 + $0x8] sm:$0xff]  ;;  %v2641_v1 = vld [vmem:[#allocation5 + $0x18] sm:$0xff]  ;;  %vm141_vm0 = vcmask 261120   ;;  %vm247_vm1 = vcmask 1040384  }
  0x19   :  { %v2643_v2 = vld [vmem:[#allocation5 + $0x28] sm:$0xff]  ;;  %v2638_v3 = vld [vmem:[#allocation5] sm:$0xff]  ;;  %154 = vmatpush.bf16.msra.mxu0 %v2639_v0  ;;  %194 = vmatpush.bf16.msra.mxu1 %v2641_v1  ;;  %v2640_v4 = vld [vmem:[#allocation5 + $0x10] sm:$0xff]  ;;  %vm268_vm2 = vcmask 1046528   ;;  %vm305_vm3 = vcmask 1041409   ;;  %s2531_s8 = sshll.u32 %s3604_s6, 4  ;;  %s2532_s8 = int_to_ptr.hbm [resolvable:$true] %s2531_s8 }
  0x1a   :  { %v2953_v5 = vld [vmem:[#allocation2] sm:$0xff]  ;;  %v2955_v6 = vld [vmem:[#allocation2 + $0x8] sm:$0xff]  ;;  %230 = vmatpush.bf16.msra.mxu2 %v2643_v2  ;;  %v2964_v13 = vld [vmem:[#allocation2 + $0x10] sm:$0xff] }
  0x1b   :  { %v2642_v7 = vld [vmem:[#allocation5 + $0x20] sm:$0xff]  ;;  %v111_v8 = vpack.c.bf16 %v2953_v5, %v2953_v5  ;;  %v112_v9 = vpack.c.bf16 %v2955_v6, %v2955_v6  ;;  %v2966_v14 = vld [vmem:[#allocation2 + $0x18] sm:$0xff]  ;;  %v113_v15 = vpack.c.bf16 %v2964_v13, %v2964_v13  ;;  %v2975_v25 = vld [vmem:[#allocation7] ss:$0 sm:$0xff] }
  0x1c   :  { %v114_v16 = vpack.c.bf16 %v2966_v14, %v2966_v14  ;;  %v106_v28 = vld [vmem:[#allocation10 + $0x18] sm:$0xff]  ;;  %v105_v30 = vld [vmem:[#allocation10 + $0x10] sm:$0xff]  ;;  %v104_v37 = vld [vmem:[#allocation10 + $0x8] sm:$0xff] }
  0x1d   :  { %v123_v10 = vunpack.c.l.b16 %v111_v8  ;;  %v124_v11 = vunpack.c.l.b16 %v112_v9  ;;  %155 = vmatpush.bf16.msra.mxu0 %v2638_v3  ;;  %195 = vmatpush.bf16.msra.mxu1 %v2640_v4  ;;  %v125_v17 = vunpack.c.l.b16 %v113_v15  ;;  %v2977_v29 = vand.u32 4294901760, %v106_v28  ;;  %v103_v46 = vld [vmem:[#allocation10] sm:$0xff] }
  0x1e   :  { %231 = vmatpush.bf16.msra.mxu2 %v2642_v7  ;;  %v126_v18 = vunpack.c.l.b16 %v114_v16  ;;  %v2985_v34 = vand.u32 4294901760, %v105_v30  ;;  %v2998_v41 = vand.u32 4294901760, %v104_v37  ;;  %v3012_v53 = vand.u32 4294901760, %v103_v46 }
  0x1f   :  { %v127_v12 = vpack.c.b16 %v124_v11, %v123_v10  ;;  %v2982_v33 = vsub.f32 %v106_v28, %v2977_v29  ;;  %322 = vmatpush.msra.mxu3 %v2977_v29 }
  0x20   :  { %v128_v19 = vpack.c.b16 %v126_v18, %v125_v17  ;;  %v2995_v40 = vsub.f32 %v105_v30, %v2985_v34  ;;  %v3007_v50 = vsub.f32 %v104_v37, %v2998_v41  ;;  %v3025_v57 = vsub.f32 %v103_v46, %v3012_v53 }
  0x21   :  { %2554 = vmatmul.msk.bf16.vlgmr.msra.gmra.mxu0 %vm141_vm0, %v127_v12  ;;  %2564 = vmatmul.msk.bf16.vlgmr.msra.gmra.mxu1 %vm141_vm0, %v127_v12  ;;  %v2992_v39 = vand.u32 4294901760, %v2982_v33 }
  0x22   :  { %2574 = vmatmul.msk.bf16.vlgmr.msra.gmra.mxu2 %vm141_vm0, %v127_v12  ;;  %482 = vmatpush.msrb.mxu1 %v2977_v29  ;;  %v3004_v49 = vand.u32 4294901760, %v2995_v40  ;;  %v3022_v56 = vand.u32 4294901760, %v3007_v50  ;;  %v3032_v58 = vand.u32 4294901760, %v3025_v57 }
  0x23   :  { %545 = vmatpush.msrb.mxu2 %v2977_v29  ;;  %324 = vmatpush.msra.mxu3 %v2985_v34  ;;  %v353_v7 = vsub.f32 %v2982_v33, %v2992_v39 }
  0x24   :  { %484 = vmatpush.msrb.mxu1 %v2985_v34  ;;  %451 = vmatpush.msrb.mxu0 %v2992_v39  ;;  %v359_v15 = vsub.f32 %v2995_v40, %v3004_v49  ;;  %v365_v18 = vsub.f32 %v3007_v50, %v3022_v56 }
  0x25   :  { %547 = vmatpush.msrb.mxu2 %v2985_v34  ;;  %326 = vmatpush.msra.mxu3 %v2998_v41  ;;  %v3056_v12 = vand.u32 4294901760, %v353_v7 }
  0x26   :  { %486 = vmatpush.msrb.mxu1 %v2998_v41  ;;  %455 = vmatpush.msrb.mxu0 %v3004_v49 }
  0x27   :  { %549 = vmatpush.msrb.mxu2 %v2998_v41  ;;  %328 = vmatpush.msra.mxu3 %v3012_v53 }
  0x28   :  { %488 = vmatpush.msrb.mxu1 %v3012_v53  ;;  %459 = vmatpush.msrb.mxu0 %v3022_v56 }
  0x29   :  { %551 = vmatpush.msrb.mxu2 %v3012_v53  ;;  %355 = vmatpush.msrb.mxu3 %v3056_v12 }
  0x2a   :  { %645 = vmatpush.msra.mxu1 %v2977_v29  ;;  %463 = vmatpush.msrb.mxu0 %v3032_v58 }
  0x2b   :  { %674 = vmatpush.msra.mxu2 %v2992_v39 }
  0x2c   :  { %647 = vmatpush.msra.mxu1 %v2985_v34  ;;  %616 = vmatpush.msra.mxu0 %v2982_v33 }
  0x2d   :  { %678 = vmatpush.msra.mxu2 %v3004_v49 }
  0x2e   :  { %649 = vmatpush.msra.mxu1 %v2998_v41  ;;  %619 = vmatpush.msra.mxu0 %v2995_v40 }
  0x2f   :  { %682 = vmatpush.msra.mxu2 %v3022_v56 }
  0x30   :  { %651 = vmatpush.msra.mxu1 %v3012_v53  ;;  %622 = vmatpush.msra.mxu0 %v3007_v50 }
  0x31   :  { %2555 = vmatmul.msk.bf16.gmra.mxu0 %vm141_vm0, %v128_v19  ;;  %2565 = vmatmul.msk.bf16.gmra.mxu1 %vm141_vm0, %v128_v19 }
  0x32   :  { %2575 = vmatmul.msk.bf16.gmra.mxu2 %vm141_vm0, %v128_v19  ;;  %625 = vmatpush.msra.mxu0 %v3025_v57  ;;  %v371_v19 = vsub.f32 %v3025_v57, %v3032_v58 }
  0x33   :  { %686 = vmatpush.msra.mxu2 %v3032_v58 }
  0x34   :  { %v3077_v30 = vand.u32 4294901760, %v371_v19 }
  0x9e   :  { %v157_v20 = vpop.f32.mrf.mxu0  ;;  %v197_v21 = vpop.f32.mrf.mxu1 }
  0x9f   :  { %v248_v26 = vrot.slane %v157_v20, 7  ;;  %v198_v31 = vadd.f32 %v2975_v25, %v197_v21 }
  0xa1   :  { %v258_v35 = vsel %vm247_vm1, 0.0, %v248_v26 }
  0xa2   :  { %v260_v47 = vadd.f32 %v258_v35, %v198_v31 }
  0xa5   :  { %v233_v22 = vpop.f32.mrf.mxu2 }
  0xa6   :  { %v159_v23 = vpop.f32.mrf.mxu0  ;;  %v199_v24 = vpop.f32.mrf.mxu1  ;;  %v269_v42 = vrot.slane %v233_v22, 1  ;;  %v3066_v22 = vand.u32 4294901760, %v359_v15 }
  0xa7   :  { %v249_v27 = vrot.slane %v159_v23, 7  ;;  %v200_v32 = vadd.f32 %v2975_v25, %v199_v24 }
  0xa8   :  { %361 = vmatpush.msrb.mxu3 %v3066_v22 }
  0xa9   :  { %v250_v36 = vsel %vm247_vm1, %v248_v26, %v249_v27  ;;  %v3070_v26 = vand.u32 4294901760, %v365_v18 }
  0xaa   :  { %v261_v48 = vadd.f32 %v250_v36, %v200_v32 }
  0xab   :  { %367 = vmatpush.msrb.mxu3 %v3070_v26 }
  0xad   :  { %v235_v38 = vpop.f32.mrf.mxu2  ;;  %373 = vmatpush.msrb.mxu3 %v3077_v30 }
  0xae   :  { %v270_v43 = vrot.slane %v235_v38, 1  ;;  %v162_v44 = vpop.f32.mrf.mxu0  ;;  %v202_v45 = vpop.f32.mrf.mxu1 }
  0xaf   :  { %v251_v0 = vrot.slane %v162_v44, 7  ;;  %v203_v3 = vadd.f32 %v2975_v25, %v202_v45 }
  0xb0   :  { %v271_v51 = vsel %vm268_vm2, %v269_v42, %v270_v43  ;;  %v279_v52 = vsel %vm268_vm2, %v270_v43, 0.0 }
  0xb1   :  { %v3016_v54 = vadd.f32 %v271_v51, %v260_v47  ;;  %v3018_v55 = vadd.f32 %v279_v52, %v261_v48  ;;  %v259_v9 = vsel %vm247_vm1, 0.0, %v251_v0 }
  0xb2   :  { %v262_v20 = vadd.f32 %v259_v9, %v203_v3 }
  0xb3   :  { %v285_v59 = vsel %vm141_vm0, %v3016_v54, 0.0  ;;  %v286_v60 = vsel %vm141_vm0, %v3018_v55, 0.0 }
  0xb4   :  { %v287_v63 = vadd.f32 %v286_v60, %v285_v59 }
  0xb5   :  { %v238_v61 = vpop.f32.mrf.mxu2 }
  0xb6   :  { %v164_v62 = vpop.f32.mrf.mxu0  ;;  %v204_v2 = vpop.f32.mrf.mxu1  ;;  %v288_v8 = vrot.slane %v287_v63, 4  ;;  %v272_v16 = vrot.slane %v238_v61, 1 }
  0xb7   :  { %v252_v1 = vrot.slane %v164_v62, 7  ;;  %v205_v4 = vadd.f32 %v2975_v25, %v204_v2 }
  0xb8   :  { %v289_v23 = vadd.f32 %v288_v8, %v287_v63 }
  0xb9   :  { %v253_v10 = vsel %vm247_vm1, %v251_v0, %v252_v1 }
  0xba   :  { %v263_v21 = vadd.f32 %v253_v10, %v205_v4  ;;  %v290_v35 = vrot.slane %v289_v23, 2 }
  0xbc   :  { %v291_v38 = vadd.f32 %v290_v35, %v289_v23 }
  0xbd   :  { %v240_v11 = vpop.f32.mrf.mxu2 }
  0xbe   :  { %v273_v17 = vrot.slane %v240_v11, 1  ;;  %v292_v44 = vrot.slane %v291_v38, 1 }
  0xc0   :  { %v274_v24 = vsel %vm268_vm2, %v272_v16, %v273_v17  ;;  %v280_v25 = vsel %vm268_vm2, %v273_v17, 0.0  ;;  %v293_v47 = vadd.f32 %v292_v44, %v291_v38 }
  0xc1   :  { %v3072_v27 = vadd.f32 %v274_v24, %v262_v20  ;;  %v3074_v28 = vadd.f32 %v280_v25, %v263_v21 }
  0xc3   :  { %v294_v31 = vsel %vm141_vm0, %v3072_v27, 0.0  ;;  %v295_v32 = vsel %vm141_vm0, %v3074_v28, 0.0 }
  0xc4   :  { %v296_v36 = vadd.f32 %v295_v32, %v294_v31 }
  0xc6   :  { %v297_v37 = vrot.slane %v296_v36, 4 }
  0xc8   :  { %v298_v42 = vadd.f32 %v297_v37, %v296_v36 }
  0xca   :  { %v299_v43 = vrot.slane %v298_v42, 2 }
  0xcc   :  { %v300_v45 = vadd.f32 %v299_v43, %v298_v42 }
  0xce   :  { %v301_v46 = vrot.slane %v300_v45, 1 }
  0xd0   :  { %v302_v48 = vadd.f32 %v301_v46, %v300_v45 }
  0xd2   :  { %v306_v51 = vsel %vm305_vm3, %v302_v48, %v293_v47 }
  0xd3   :  { %v307_v52 = vsel %vm141_vm0, %v306_v51, 0 }
  0xd4   :  { %v329_v59 = vand.u32 4294901760, %v307_v52 }
  0xd6   :  { %465 = vmatmul.f32.vlgmr.msrb.gmra.mxu0 %v329_v59  ;;  %490 = vmatmul.f32.vlgmr.msrb.gmra.mxu1 %v329_v59  ;;  %v330_v60 = vsub.f32 %v307_v52, %v329_v59 }
  0xd8   :  { %v331_v61 = vand.u32 4294901760, %v330_v60 }
  0xda   :  { %v332_v62 = vsub.f32 %v330_v60, %v331_v61 }
  0xdc   :  { %v333_v63 = vand.u32 4294901760, %v332_v62 }
  0xde   :  { %334 = vmatmul.f32.vlgmr.msra.gmra.mxu3 %v333_v63 }
  0xdf   :  { %393 = vmatpush.msra.mxu3 %v2982_v33 }
  0xe1   :  { %396 = vmatpush.msra.mxu3 %v2995_v40 }
  0xe3   :  { %399 = vmatpush.msra.mxu3 %v3007_v50 }
  0xe5   :  { %402 = vmatpush.msra.mxu3 %v3025_v57 }
  0xe6   :  { %375 = vmatmul.f32.vlgmr.msrb.gmra.mxu3 %v329_v59 }
  0xe7   :  { %422 = vmatpush.msrb.mxu3 %v2977_v29 }
  0xe9   :  { %424 = vmatpush.msrb.mxu3 %v2985_v34 }
  0xeb   :  { %426 = vmatpush.msrb.mxu3 %v2998_v41 }
  0xed   :  { %428 = vmatpush.msrb.mxu3 %v3012_v53 }
  0xee   :  { %405 = vmatmul.f32.vlgmr.msra.gmra.mxu3 %v330_v60 }
  0xef   :  { %578 = vmatpush.msra.mxu3 %v3056_v12 }
  0xf1   :  { %584 = vmatpush.msra.mxu3 %v3066_v22 }
  0xf3   :  { %590 = vmatpush.msra.mxu3 %v3070_v26 }
  0xf5   :  { %596 = vmatpush.msra.mxu3 %v3077_v30 }
  0xf6   :  { %432 = vmatmul.f32.vlgmr.msrb.gmra.mxu3 %v331_v61 }
  0xf7   :  { %705 = vmatpush.msrb.mxu3 %v2977_v29 }
  0xf9   :  { %707 = vmatpush.msrb.mxu3 %v2985_v34 }
  0xfb   :  { %709 = vmatpush.msrb.mxu3 %v2998_v41 }
  0xfd   :  { %711 = vmatpush.msrb.mxu3 %v3012_v53 }
 0x153   :  { %v466_v9 = vpop.f32.mrf.mxu0  ;;  %v491_v11 = vpop.f32.mrf.mxu1 }
 0x161   :  { %v335_v0 = vpop.f32.mrf.mxu3 }
 0x169   :  { %v376_v1 = vpop.f32.mrf.mxu3 }
 0x16a   :  { %v377_v3 = vadd.f32 %v376_v1, %v335_v0 }
 0x171   :  { %v406_v2 = vpop.f32.mrf.mxu3 }
 0x172   :  { %v407_v4 = vadd.f32 %v406_v2, %v377_v3 }
 0x179   :  { %v433_v7 = vpop.f32.mrf.mxu3 }
 0x17a   :  { %v434_v8 = vadd.f32 %v433_v7, %v407_v4 }
 0x17c   :  { %v467_v10 = vadd.f32 %v466_v9, %v434_v8 }
 0x17e   :  { %v492_v15 = vadd.f32 %v491_v11, %v467_v10 }
 0x180   :  { %v495_v16 = vrot.slane %v492_v15, 1  ;;  %v496_v17 = vperm.slane %v492_v15, 0 }
 0x182   :  { %v497_v18 = vperm.slane %v495_v16, 0  ;;  %v3104_v19 = vsub.f32 %v3016_v54, %v496_v17  ;;  %v3107_v20 = vsub.f32 %v3018_v55, %v496_v17 }
 0x184   :  { %v3110_v21 = vsub.f32 %v3072_v27, %v497_v18  ;;  %v3113_v23 = vsub.f32 %v3074_v28, %v497_v18  ;;  %v504_v24 = vmul.f32 %v3104_v19, %v3104_v19  ;;  %v505_v25 = vmul.f32 %v3107_v20, %v3107_v20 }
 0x186   :  { %v506_v31 = vmul.f32 %v3110_v21, %v3110_v21  ;;  %v507_v54 = vmul.f32 %v3113_v23, %v3113_v23  ;;  %v508_v55 = vsel %vm141_vm0, %v504_v24, 0.0  ;;  %v509_v27 = vsel %vm141_vm0, %v505_v25, 0.0 }
 0x187   :  { %v510_v32 = vadd.f32 %v509_v27, %v508_v55  ;;  %v2649_v27 = vld [vmem:[#allocation5 + $0x58] sm:$0xff] }
 0x188   :  { %v517_v28 = vsel %vm141_vm0, %v506_v31, 0.0  ;;  %v518_v35 = vsel %vm141_vm0, %v507_v54, 0.0 }
 0x189   :  { %v511_v36 = vrot.slane %v510_v32, 4  ;;  %v519_v37 = vadd.f32 %v518_v35, %v517_v28  ;;  %v2647_v28 = vld [vmem:[#allocation5 + $0x48] sm:$0xff] }
 0x18a   :  { %997 = vmatpush.bf16.msrb.mxu1 %v2647_v28 }
 0x18b   :  { %v512_v38 = vadd.f32 %v511_v36, %v510_v32  ;;  %v520_v42 = vrot.slane %v519_v37, 4  ;;  %v2645_v32 = vld [vmem:[#allocation5 + $0x38] sm:$0xff]  ;;  %v2670_v36 = vld [vmem:[#allocation8] ss:$0 sm:$0xff] }
 0x18c   :  { %956 = vmatpush.bf16.msrb.mxu0 %v2645_v32 }
 0x18d   :  { %v513_v43 = vrot.slane %v512_v38, 2  ;;  %v521_v44 = vadd.f32 %v520_v42, %v519_v37  ;;  %v2648_v37 = vld [vmem:[#allocation5 + $0x50] sm:$0xff] }
 0x18f   :  { %v514_v45 = vadd.f32 %v513_v43, %v512_v38  ;;  %v522_v46 = vrot.slane %v521_v44, 2  ;;  %v2644_v38 = vld [vmem:[#allocation5 + $0x30] sm:$0xff]  ;;  %v2646_v43 = vld [vmem:[#allocation5 + $0x40] sm:$0xff] }
 0x190   :  { %957 = vmatpush.bf16.msrb.mxu0 %v2644_v38  ;;  %998 = vmatpush.bf16.msrb.mxu1 %v2646_v43 }
 0x191   :  { %v515_v47 = vrot.slane %v514_v45, 1  ;;  %v523_v48 = vadd.f32 %v522_v46, %v521_v44 }
 0x193   :  { %v524_v51 = vrot.slane %v523_v48, 1  ;;  %v516_v52 = vadd.f32 %v515_v47, %v514_v45 }
 0x195   :  { %v525_v59 = vadd.f32 %v524_v51, %v523_v48  ;;  %v2671_v48 = vld [vmem:[%s3602_s4] ss:$0 sm:$0xff] }
 0x197   :  { %v529_v60 = vsel %vm305_vm3, %v525_v59, %v516_v52 }
 0x198   :  { %v530_v61 = vsel %vm141_vm0, %v529_v60, 0 }
 0x199   :  { %v552_v62 = vand.u32 4294901760, %v530_v61 }
 0x19b   :  { %598 = vmatmul.f32.vlgmr.msra.gmra.mxu3 %v552_v62  ;;  %v553_v63 = vsub.f32 %v530_v61, %v552_v62 }
 0x19c   :  { %1122 = vmatpush.msra.mxu3 %v2977_v29 }
 0x19d   :  { %628 = vmatmul.f32.vlgmr.msra.gmra.mxu0 %v553_v63  ;;  %v554_v0 = vand.u32 4294901760, %v553_v63 }
 0x19e   :  { %1124 = vmatpush.msra.mxu3 %v2985_v34  ;;  %1251 = vmatpush.msra.mxu0 %v2992_v39 }
 0x19f   :  { %655 = vmatmul.f32.vlgmr.msra.gmra.mxu1 %v554_v0  ;;  %v555_v1 = vsub.f32 %v553_v63, %v554_v0 }
 0x1a0   :  { %1126 = vmatpush.msra.mxu3 %v2998_v41  ;;  %1282 = vmatpush.msra.mxu1 %v2977_v29 }
 0x1a1   :  { %v556_v2 = vand.u32 4294901760, %v555_v1  ;;  %1255 = vmatpush.msra.mxu0 %v3004_v49 }
 0x1a2   :  { %1128 = vmatpush.msra.mxu3 %v3012_v53  ;;  %1284 = vmatpush.msra.mxu1 %v2985_v34 }
 0x1a3   :  { %557 = vmatmul.f32.vlgmr.msrb.gmra.mxu2 %v556_v2  ;;  %713 = vmatmul.f32.vlgmr.msrb.gmra.mxu3 %v552_v62 }
 0x1a4   :  { %1155 = vmatpush.msrb.mxu3 %v3056_v12  ;;  %1033 = vmatpush.bf16.msrb.mxu2 %v2649_v27 }
 0x1a5   :  { %1259 = vmatpush.msra.mxu0 %v3022_v56  ;;  %1286 = vmatpush.msra.mxu1 %v2998_v41 }
 0x1a6   :  { %1161 = vmatpush.msrb.mxu3 %v3066_v22 }
 0x1a7   :  { %1263 = vmatpush.msra.mxu0 %v3032_v58  ;;  %1288 = vmatpush.msra.mxu1 %v3012_v53 }
 0x1a8   :  { %1167 = vmatpush.msrb.mxu3 %v3070_v26  ;;  %1034 = vmatpush.bf16.msrb.mxu2 %v2648_v37 }
 0x1aa   :  { %1173 = vmatpush.msrb.mxu3 %v3077_v30 }
 0x1ab   :  { %688 = vmatmul.f32.vlgmr.msra.gmra.mxu2 %v552_v62 }
 0x1ac   :  { %1346 = vmatpush.msra.mxu2 %v2977_v29 }
 0x1ae   :  { %1348 = vmatpush.msra.mxu2 %v2985_v34 }
 0x1b0   :  { %1350 = vmatpush.msra.mxu2 %v2998_v41 }
 0x1b2   :  { %1352 = vmatpush.msra.mxu2 %v3012_v53 }
 0x21a   :  { %v629_v9 = vpop.f32.mrf.mxu0 }
 0x21c   :  { %v656_v11 = vpop.f32.mrf.mxu1 }
 0x21e   :  { %v599_v3 = vpop.f32.mrf.mxu3 }
 0x226   :  { %v558_v4 = vpop.f32.mrf.mxu2  ;;  %v714_v18 = vpop.f32.mrf.mxu3 }
 0x227   :  { %v559_v7 = vadd.f32 1e-05, %v558_v4 }
 0x229   :  { %v600_v8 = vadd.f32 %v599_v3, %v559_v7 }
 0x22b   :  { %v630_v10 = vadd.f32 %v629_v9, %v600_v8 }
 0x22d   :  { %v657_v15 = vadd.f32 %v656_v11, %v630_v10 }
 0x22e   :  { %v689_v16 = vpop.f32.mrf.mxu2 }
 0x22f   :  { %v690_v17 = vadd.f32 %v689_v16, %v657_v15 }
 0x231   :  { %v715_v24 = vadd.f32 %v714_v18, %v690_v17 }
 0x233   :  { %2678 = vrsqrt.f32 %v715_v24  ;;  %vm723_vm5 = vweird.f32 %v715_v24 }
 0x239   :  { %v2679_v25 = vpop.eup %2678 }
 0x23a   :  { %v718_v31 = vmul.f32 %v2679_v25, %v715_v24  ;;  %vm724_vm4 = vweird.f32 %v2679_v25 }
 0x23b   :  { %vm725_vm6 = vmor %vm723_vm5, %vm724_vm4 }
 0x23c   :  { %v719_v54 = vmul.f32 %v2679_v25, %v718_v31 }
 0x23e   :  { %v720_v55 = vmul.f32 0.5, %v719_v54 }
 0x240   :  { %v721_v35 = vsub.f32 1.5, %v720_v55 }
 0x242   :  { %v722_v42 = vmul.f32 %v2679_v25, %v721_v35 }
 0x244   :  { %v726_v44 = vsel %vm725_vm6, %v2679_v25, %v722_v42 }
 0x245   :  { %v730_v45 = vmul.f32 %v2670_v36, %v726_v44 }
 0x247   :  { %v732_v46 = vrot.slane %v730_v45, 1  ;;  %v733_v47 = vperm.slane %v730_v45, 0 }
 0x249   :  { %v734_v51 = vperm.slane %v732_v46, 0  ;;  %v737_v52 = vmul.f32 %v733_v47, %v3104_v19  ;;  %v738_v59 = vmul.f32 %v733_v47, %v3107_v20 }
 0x24b   :  { %v739_v60 = vmul.f32 %v734_v51, %v3110_v21  ;;  %v740_v61 = vmul.f32 %v734_v51, %v3113_v23  ;;  %v3151_v62 = vadd.f32 %v2671_v48, %v737_v52  ;;  %v3153_v63 = vadd.f32 %v2671_v48, %v738_v59 }
 0x24d   :  { %v3159_v19 = vmul.f32 0.70710677, %v3151_v62  ;;  %v3162_v20 = vmul.f32 0.70710677, %v3153_v63  ;;  %v3165_v21 = vadd.f32 %v2671_v48, %v739_v60  ;;  %v3167_v23 = vadd.f32 %v2671_v48, %v740_v61 }
 0x24f   :  { %v765_v0 = vand.u32 2147483647, %v3159_v19  ;;  %v766_v1 = vand.u32 2147483647, %v3162_v20  ;;  %v3173_v4 = vmul.f32 0.70710677, %v3165_v21 }
 0x250   :  { %v3176_v7 = vmul.f32 0.70710677, %v3167_v23 }
 0x251   :  { %v769_v2 = vmul.f32 0.3275911, %v765_v0  ;;  %v770_v3 = vmul.f32 0.3275911, %v766_v1  ;;  %v3179_v10 = vand.u32 2147483647, %v3173_v4 }
 0x252   :  { %v3182_v11 = vand.u32 2147483647, %v3176_v7  ;;  %v873_v18 = vsub.f32 0.0, %v765_v0  ;;  %v874_v32 = vsub.f32 0.0, %v766_v1 }
 0x253   :  { %v773_v8 = vadd.f32 1.0, %v769_v2  ;;  %v774_v9 = vadd.f32 1.0, %v770_v3  ;;  %v771_v15 = vmul.f32 0.3275911, %v3179_v10 }
 0x254   :  { %v772_v16 = vmul.f32 0.3275911, %v3182_v11  ;;  %v877_v35 = vmul.f32 %v873_v18, %v765_v0  ;;  %v878_v45 = vmul.f32 %v874_v32, %v766_v1 }
 0x255   :  { %2680 = vrcp.f32 %v773_v8  ;;  %v3186_v24 = vadd.f32 1.0, %v771_v15  ;;  %v788_v36 = vand.u32 2147483648, %v773_v8  ;;  %v786_v38 = vand.u32 2147483647, %v773_v8 }
 0x256   :  { %2682 = vrcp.f32 %v774_v9  ;;  %v3188_v25 = vadd.f32 1.0, %v772_v16  ;;  %v803_v42 = vand.u32 2147483648, %v774_v9  ;;  %v801_v44 = vand.u32 2147483647, %v774_v9 }
 0x257   :  { %2684 = vrcp.f32 %v3186_v24  ;;  %vm782_vm9 = vweird.f32 %v773_v8  ;;  %v881_v48 = vmul.f32 1.442695, %v877_v35  ;;  %v789_v51 = vor.u32 1.1754944e-38, %v788_v36 }
 0x258   :  { %2686 = vrcp.f32 %v3188_v25  ;;  %vm797_vm11 = vweird.f32 %v774_v9  ;;  %vm787_vm12 = vcmp.eq.f32.partialorder %v786_v38, 8.507059e+37  ;;  %v804_v61 = vor.u32 1.1754944e-38, %v803_v42 }
 0x259   :  { %vm802_vm14 = vcmp.eq.f32.partialorder %v801_v44, 8.507059e+37  ;;  %v883_v15 = vmul.f32 1.442695, %v878_v45  ;;  %v831_v36 = vand.u32 2147483647, %v3188_v25  ;;  %vm812_vm5 = vweird.f32 %v3186_v24 }
 0x25a   :  { %v875_v42 = vsub.f32 0.0, %v3179_v10  ;;  %2688 = vpow2.f32 %v881_v48 }
 0x25b   :  { %v2681_v17 = vpop.eup %2680  ;;  %2690 = vpow2.f32 %v883_v15 }
 0x25c   :  { %v2683_v31 = vpop.eup %2682  ;;  %v778_v54 = vmul.f32 %v2681_v17, %v773_v8  ;;  %vm783_vm7 = vweird.f32 %v2681_v17 }
 0x25d   :  { %v793_v55 = vmul.f32 %v2683_v31, %v774_v9  ;;  %vm798_vm8 = vweird.f32 %v2683_v31  ;;  %v2685_v47 = vpop.eup %2684  ;;  %vm784_vm10 = vmor %vm782_vm9, %vm783_vm7  ;;  %v818_v9 = vand.u32 2147483648, %v3186_v24  ;;  %vm827_vm7 = vweird.f32 %v3188_v25 }
 0x25e   :  { %v779_v27 = vsub.f32 1.0, %v778_v54  ;;  %v2687_v59 = vpop.eup %2686  ;;  %vm799_vm13 = vmor %vm797_vm11, %vm798_vm8  ;;  %v808_v0 = vmul.f32 %v2685_v47, %v3186_v24  ;;  %vm813_vm15 = vweird.f32 %v2685_v47  ;;  %vm757_vm11 = vcmp.ge.f32.partialorder %v3159_v19, 0.0 }
 0x25f   :  { %v794_v28 = vsub.f32 1.0, %v793_v55  ;;  %v823_v1 = vmul.f32 %v2687_v59, %v3188_v25  ;;  %v816_v55 = vand.u32 2147483647, %v3186_v24  ;;  %vm828_vm4 = vweird.f32 %v2687_v59  ;;  %vm814_vm6 = vmor %vm812_vm5, %vm813_vm15 }
 0x260   :  { %v780_v37 = vmul.f32 %v2681_v17, %v779_v27  ;;  %v809_v18 = vsub.f32 1.0, %v808_v0  ;;  %v819_v44 = vor.u32 1.1754944e-38, %v818_v9  ;;  %vm829_vm9 = vmor %vm827_vm7, %vm828_vm4  ;;  %v2689_v48 = vpop.eup %2688 }
 0x261   :  { %v795_v43 = vmul.f32 %v2683_v31, %v794_v28  ;;  %v833_v28 = vand.u32 2147483648, %v3188_v25  ;;  %vm817_vm8 = vcmp.eq.f32.partialorder %v816_v55, 8.507059e+37 }
 0x262   :  { %v781_v46 = vadd.f32 %v2681_v17, %v780_v37  ;;  %v810_v32 = vmul.f32 %v2685_v47, %v809_v18 }
 0x263   :  { %v796_v52 = vadd.f32 %v2683_v31, %v795_v43 }
 0x264   :  { %v785_v60 = vsel %vm784_vm10, %v2681_v17, %v781_v46  ;;  %v824_v17 = vsub.f32 1.0, %v823_v1  ;;  %v811_v38 = vadd.f32 %v2685_v47, %v810_v32  ;;  %vm832_vm10 = vcmp.eq.f32.partialorder %v831_v36, 8.507059e+37 }
 0x265   :  { %v790_v2 = vsel %vm787_vm12, %v789_v51, %v785_v60  ;;  %v800_v3 = vsel %vm799_vm13, %v2683_v31, %v796_v52  ;;  %v834_v52 = vor.u32 1.1754944e-38, %v833_v28  ;;  %vm758_vm12 = vcmp.ge.f32.partialorder %v3162_v20, 0.0 }
 0x266   :  { %v805_v8 = vsel %vm802_vm14, %v804_v61, %v800_v3  ;;  %v837_v16 = vmul.f32 1.0614054, %v790_v2  ;;  %v825_v31 = vmul.f32 %v2687_v59, %v824_v17  ;;  %v815_v51 = vsel %vm814_vm6, %v2685_v47, %v811_v38 }
 0x267   :  { %v838_v54 = vmul.f32 1.0614054, %v805_v8  ;;  %v820_v61 = vsel %vm817_vm8, %v819_v44, %v815_v51  ;;  %v879_v47 = vmul.f32 %v875_v42, %v3179_v10  ;;  %vm759_vm13 = vcmp.ge.f32.partialorder %v3173_v4, 0.0 }
 0x268   :  { %v841_v27 = vadd.f32 -1.4531521, %v837_v16  ;;  %v826_v45 = vadd.f32 %v2687_v59, %v825_v31  ;;  %v839_v24 = vmul.f32 1.0614054, %v820_v61  ;;  %v876_v16 = vsub.f32 0.0, %v3182_v11 }
 0x269   :  { %v842_v35 = vadd.f32 -1.4531521, %v838_v54  ;;  %vm760_vm14 = vcmp.ge.f32.partialorder %v3176_v7, 0.0 }
 0x26a   :  { %v845_v37 = vmul.f32 %v841_v27, %v790_v2  ;;  %v830_v0 = vsel %vm829_vm9, %v2687_v59, %v826_v45  ;;  %v843_v17 = vadd.f32 -1.4531521, %v839_v24  ;;  %v880_v59 = vmul.f32 %v876_v16, %v3182_v11 }
 0x26b   :  { %v846_v43 = vmul.f32 %v842_v35, %v805_v8  ;;  %v835_v1 = vsel %vm832_vm10, %v834_v52, %v830_v0  ;;  %v2895_v24 = vmov -1.0  }
 0x26c   :  { %v849_v46 = vadd.f32 1.4214138, %v845_v37  ;;  %v840_v54 = vmul.f32 1.0614054, %v835_v1  ;;  %v847_v32 = vmul.f32 %v843_v17, %v820_v61  ;;  %v764_v4 = vsel %vm760_vm14, 1.0, %v2895_v24 }
 0x26d   :  { %v850_v60 = vadd.f32 1.4214138, %v846_v43  ;;  %v885_v43 = vmul.f32 1.442695, %v879_v47 }
 0x26e   :  { %v853_v3 = vmul.f32 %v849_v46, %v790_v2  ;;  %v844_v27 = vadd.f32 -1.4531521, %v840_v54  ;;  %v851_v36 = vadd.f32 1.4214138, %v847_v32  ;;  %v887_v46 = vmul.f32 1.442695, %v880_v59 }
 0x26f   :  { %v854_v18 = vmul.f32 %v850_v60, %v805_v8  ;;  %v2691_v60 = vpop.eup %2690  ;;  %2692 = vpow2.f32 %v885_v43 }
 0x270   :  { %v857_v9 = vadd.f32 -0.28449672, %v853_v3  ;;  %v848_v35 = vmul.f32 %v844_v27, %v835_v1  ;;  %v855_v45 = vmul.f32 %v851_v36, %v820_v61  ;;  %2694 = vpow2.f32 %v887_v46 }
 0x271   :  { %v858_v25 = vadd.f32 -0.28449672, %v854_v18 }
 0x272   :  { %v861_v55 = vmul.f32 %v857_v9, %v790_v2  ;;  %v852_v38 = vadd.f32 1.4214138, %v848_v35  ;;  %v859_v15 = vadd.f32 -0.28449672, %v855_v45 }
 0x273   :  { %v862_v28 = vmul.f32 %v858_v25, %v805_v8  ;;  %v749_v25 = vmul.f32 0.5, %v3151_v62 }
 0x274   :  { %v865_v31 = vadd.f32 0.2548296, %v861_v55  ;;  %v856_v52 = vmul.f32 %v852_v38, %v835_v1  ;;  %v863_v3 = vmul.f32 %v859_v15, %v820_v61  ;;  %v750_v55 = vmul.f32 0.5, %v3153_v63 }
 0x275   :  { %v866_v37 = vadd.f32 0.2548296, %v862_v28  ;;  %v2693_v47 = vpop.eup %2692  ;;  %v763_v63 = vsel %vm759_vm13, 1.0, %v2895_v24 }
 0x276   :  { %v869_v44 = vmul.f32 %v865_v31, %v790_v2  ;;  %v860_v42 = vadd.f32 -0.28449672, %v856_v52  ;;  %v761_v2 = vsel %vm757_vm11, 1.0, %v2895_v24  ;;  %v867_v9 = vadd.f32 0.2548296, %v863_v3  ;;  %v2695_v28 = vpop.eup %2694 }
 0x277   :  { %v870_v51 = vmul.f32 %v866_v37, %v805_v8  ;;  %v762_v8 = vsel %vm758_vm12, 1.0, %v2895_v24 }
 0x278   :  { %v889_v10 = vmul.f32 %v2689_v48, %v869_v44  ;;  %v864_v18 = vmul.f32 %v860_v42, %v835_v1  ;;  %v871_v27 = vmul.f32 %v867_v9, %v820_v61 }
 0x279   :  { %v890_v11 = vmul.f32 %v2691_v60, %v870_v51  ;;  %v751_v51 = vmul.f32 0.5, %v3165_v21 }
 0x27a   :  { %v893_v0 = vsub.f32 1.0, %v889_v10  ;;  %v868_v17 = vadd.f32 0.2548296, %v864_v18  ;;  %v891_v31 = vmul.f32 %v2693_v47, %v871_v27 }
 0x27b   :  { %v894_v16 = vsub.f32 1.0, %v890_v11 }
 0x27c   :  { %v897_v54 = vmul.f32 %v893_v0, %v761_v2  ;;  %v872_v59 = vmul.f32 %v868_v17, %v835_v1  ;;  %v895_v62 = vsub.f32 1.0, %v891_v31 }
 0x27d   :  { %v898_v19 = vmul.f32 %v894_v16, %v762_v8 }
 0x27e   :  { %v901_v20 = vadd.f32 1.0, %v897_v54  ;;  %v892_v37 = vmul.f32 %v2695_v28, %v872_v59  ;;  %v899_v44 = vmul.f32 %v895_v62, %v763_v63  ;;  %v2672_v54 = vld [vmem:[#allocation7 + $0x1] ss:$0 sm:$0xff] }
 0x27f   :  { %v902_v32 = vadd.f32 1.0, %v898_v19 }
 0x280   :  { %v905_v35 = vmul.f32 %v901_v20, %v749_v25  ;;  %v896_v43 = vsub.f32 1.0, %v892_v37 }
 0x281   :  { %v906_v36 = vmul.f32 %v902_v32, %v750_v55 }
 0x282   :  { %v3213_v38 = vadd.f32 %v905_v35, %v2953_v5  ;;  %v900_v45 = vmul.f32 %v896_v43, %v764_v4  ;;  %v903_v5 = vadd.f32 1.0, %v899_v44 }
 0x283   :  { %v3216_v61 = vadd.f32 %v906_v36, %v2955_v6  ;;  %v752_v6 = vmul.f32 0.5, %v3167_v23 }
 0x284   :  { %v913_v1 = vpack.c.bf16 %v3213_v38, %v3213_v38  ;;  %v904_v52 = vadd.f32 1.0, %v900_v45  ;;  %v907_v10 = vmul.f32 %v903_v5, %v751_v51 }
 0x285   :  { %v914_v7 = vpack.c.bf16 %v3216_v61, %v3216_v61 }
 0x286   :  { %v926_v46 = vunpack.c.l.b16 %v913_v1  ;;  %v908_v15 = vmul.f32 %v904_v52, %v752_v6  ;;  %v3231_v11 = vadd.f32 %v907_v10, %v2964_v13 }
 0x287   :  { %v927_v48 = vunpack.c.l.b16 %v914_v7 }
 0x288   :  { %v3234_v42 = vadd.f32 %v908_v15, %v2966_v14  ;;  %v915_v21 = vpack.c.bf16 %v3231_v11, %v3231_v11 }
 0x289   :  { %v930_v60 = vpack.c.b16 %v927_v48, %v926_v46 }
 0x28a   :  { %v916_v13 = vpack.c.bf16 %v3234_v42, %v3234_v42  ;;  %v928_v14 = vunpack.c.l.b16 %v915_v21 }
 0x28b   :  { %2584 = vmatmul.msk.bf16.vlgmr.msrb.gmra.mxu0 %vm141_vm0, %v930_v60  ;;  %2594 = vmatmul.msk.bf16.vlgmr.msrb.gmra.mxu1 %vm141_vm0, %v930_v60 }
 0x28c   :  { %2604 = vmatmul.msk.bf16.vlgmr.msrb.gmra.mxu2 %vm141_vm0, %v930_v60  ;;  %1417 = vmatpush.msrb.mxu0 %v2982_v33  ;;  %v929_v23 = vunpack.c.l.b16 %v916_v13 }
 0x28d   :  { %1446 = vmatpush.msrb.mxu1 %v2977_v29  ;;  %1475 = vmatpush.msrb.mxu2 %v2992_v39 }
 0x28e   :  { %1420 = vmatpush.msrb.mxu0 %v2995_v40  ;;  %v931_v0 = vpack.c.b16 %v929_v23, %v928_v14 }
 0x28f   :  { %1448 = vmatpush.msrb.mxu1 %v2985_v34  ;;  %1479 = vmatpush.msrb.mxu2 %v3004_v49 }
 0x290   :  { %1423 = vmatpush.msrb.mxu0 %v3007_v50 }
 0x291   :  { %1450 = vmatpush.msrb.mxu1 %v2998_v41  ;;  %1483 = vmatpush.msrb.mxu2 %v3022_v56 }
 0x292   :  { %1426 = vmatpush.msrb.mxu0 %v3025_v57 }
 0x293   :  { %1452 = vmatpush.msrb.mxu1 %v3012_v53  ;;  %1487 = vmatpush.msrb.mxu2 %v3032_v58 }
 0x29b   :  { %2585 = vmatmul.msk.bf16.gmra.mxu0 %vm141_vm0, %v931_v0  ;;  %2595 = vmatmul.msk.bf16.gmra.mxu1 %vm141_vm0, %v931_v0 }
 0x29c   :  { %2605 = vmatmul.msk.bf16.gmra.mxu2 %vm141_vm0, %v931_v0 }
 0x308   :  { %v959_v3 = vpop.f32.mrf.mxu0  ;;  %v1000_v2 = vpop.f32.mrf.mxu1 }
 0x309   :  { %v1050_v9 = vrot.slane %v959_v3, 7  ;;  %v1001_v17 = vadd.f32 %v2672_v54, %v1000_v2 }
 0x30b   :  { %v1060_v20 = vsel %vm247_vm1, 0.0, %v1050_v9 }
 0x30c   :  { %v1062_v35 = vadd.f32 %v1060_v20, %v1001_v17 }
 0x30f   :  { %v1036_v16 = vpop.f32.mrf.mxu2 }
 0x310   :  { %v961_v18 = vpop.f32.mrf.mxu0  ;;  %v1002_v8 = vpop.f32.mrf.mxu1  ;;  %v1070_v55 = vrot.slane %v1036_v16, 1 }
 0x311   :  { %v1051_v19 = vrot.slane %v961_v18, 7  ;;  %v1003_v25 = vadd.f32 %v2672_v54, %v1002_v8 }
 0x313   :  { %v1052_v27 = vsel %vm247_vm1, %v1050_v9, %v1051_v19 }
 0x314   :  { %v1063_v31 = vadd.f32 %v1052_v27, %v1003_v25 }
 0x317   :  { %v1038_v47 = vpop.f32.mrf.mxu2 }
 0x318   :  { %v1071_v32 = vrot.slane %v1038_v47, 1  ;;  %v964_v59 = vpop.f32.mrf.mxu0  ;;  %v1005_v28 = vpop.f32.mrf.mxu1 }
 0x319   :  { %v1053_v45 = vrot.slane %v964_v59, 7  ;;  %v1006_v48 = vadd.f32 %v2672_v54, %v1005_v28 }
 0x31a   :  { %v1072_v36 = vsel %vm268_vm2, %v1070_v55, %v1071_v32  ;;  %v1080_v37 = vsel %vm268_vm2, %v1071_v32, 0.0 }
 0x31b   :  { %v3258_v62 = vadd.f32 %v1072_v36, %v1062_v35  ;;  %v3260_v63 = vadd.f32 %v1080_v37, %v1063_v31  ;;  %v1061_v52 = vsel %vm247_vm1, 0.0, %v1053_v45 }
 0x31c   :  { %v1064_v13 = vadd.f32 %v1061_v52, %v1006_v48 }
 0x31d   :  { %v1086_v43 = vsel %vm141_vm0, %v3258_v62, 0.0  ;;  %v1087_v1 = vsel %vm141_vm0, %v3260_v63, 0.0 }
 0x31e   :  { %v1088_v7 = vadd.f32 %v1087_v1, %v1086_v43 }
 0x31f   :  { %v1041_v4 = vpop.f32.mrf.mxu2 }
 0x320   :  { %v966_v44 = vpop.f32.mrf.mxu0  ;;  %v1007_v5 = vpop.f32.mrf.mxu1  ;;  %v1089_v6 = vrot.slane %v1088_v7, 4  ;;  %v1073_v15 = vrot.slane %v1041_v4, 1 }
 0x321   :  { %v1054_v46 = vrot.slane %v966_v44, 7  ;;  %v1008_v51 = vadd.f32 %v2672_v54, %v1007_v5 }
 0x322   :  { %v1090_v23 = vadd.f32 %v1089_v6, %v1088_v7 }
 0x323   :  { %v1055_v60 = vsel %vm247_vm1, %v1053_v45, %v1054_v46 }
 0x324   :  { %v1065_v14 = vadd.f32 %v1055_v60, %v1008_v51  ;;  %v1091_v54 = vrot.slane %v1090_v23, 2 }
 0x326   :  { %v1092_v17 = vadd.f32 %v1091_v54, %v1090_v23 }
 0x327   :  { %v1043_v10 = vpop.f32.mrf.mxu2 }
 0x328   :  { %v1074_v21 = vrot.slane %v1043_v10, 1  ;;  %v1093_v27 = vrot.slane %v1092_v17, 1 }
 0x32a   :  { %v1075_v0 = vsel %vm268_vm2, %v1073_v15, %v1074_v21  ;;  %v1081_v3 = vsel %vm268_vm2, %v1074_v21, 0.0  ;;  %v1094_v32 = vadd.f32 %v1093_v27, %v1092_v17 }
 0x32b   :  { %v1084_v2 = vadd.f32 %v1075_v0, %v1064_v13  ;;  %v1085_v16 = vadd.f32 %v1081_v3, %v1065_v14 }
 0x32d   :  { %v1095_v18 = vsel %vm141_vm0, %v1084_v2, 0.0  ;;  %v1096_v8 = vsel %vm141_vm0, %v1085_v16, 0.0 }
 0x32e   :  { %v1097_v9 = vadd.f32 %v1096_v8, %v1095_v18 }
 0x330   :  { %v1098_v19 = vrot.slane %v1097_v9, 4 }
 0x332   :  { %v1099_v25 = vadd.f32 %v1098_v19, %v1097_v9 }
 0x334   :  { %v1100_v20 = vrot.slane %v1099_v25, 2 }
 0x336   :  { %v1101_v47 = vadd.f32 %v1100_v20, %v1099_v25 }
 0x338   :  { %v1102_v55 = vrot.slane %v1101_v47, 1 }
 0x33a   :  { %v1103_v59 = vadd.f32 %v1102_v55, %v1101_v47 }
 0x33c   :  { %v1106_v28 = vsel %vm305_vm3, %v1103_v59, %v1094_v32 }
 0x33d   :  { %v1107_v35 = vsel %vm141_vm0, %v1106_v28, 0 }
 0x33e   :  { %v1129_v31 = vand.u32 4294901760, %v1107_v35 }
 0x340   :  { %v1130_v36 = vsub.f32 %v1107_v35, %v1129_v31  ;;  %1265 = vmatmul.f32.vlgmr.msra.gmra.mxu0 %v1129_v31  ;;  %1290 = vmatmul.f32.vlgmr.msra.gmra.mxu1 %v1129_v31 }
 0x342   :  { %v1131_v37 = vand.u32 4294901760, %v1130_v36 }
 0x344   :  { %v1132_v43 = vsub.f32 %v1130_v36, %v1131_v37 }
 0x346   :  { %v1133_v1 = vand.u32 4294901760, %v1132_v43 }
 0x348   :  { %1134 = vmatmul.f32.vlgmr.msra.gmra.mxu3 %v1133_v1 }
 0x349   :  { %1193 = vmatpush.msra.mxu3 %v2982_v33 }
 0x34b   :  { %1196 = vmatpush.msra.mxu3 %v2995_v40 }
 0x34d   :  { %1199 = vmatpush.msra.mxu3 %v3007_v50 }
 0x34f   :  { %1202 = vmatpush.msra.mxu3 %v3025_v57 }
 0x350   :  { %1175 = vmatmul.f32.vlgmr.msrb.gmra.mxu3 %v1129_v31 }
 0x351   :  { %1222 = vmatpush.msrb.mxu3 %v2977_v29 }
 0x353   :  { %1224 = vmatpush.msrb.mxu3 %v2985_v34 }
 0x355   :  { %1226 = vmatpush.msrb.mxu3 %v2998_v41 }
 0x357   :  { %1228 = vmatpush.msrb.mxu3 %v3012_v53 }
 0x358   :  { %1205 = vmatmul.f32.vlgmr.msra.gmra.mxu3 %v1130_v36 }
 0x359   :  { %1379 = vmatpush.msra.mxu3 %v3056_v12 }
 0x35b   :  { %1385 = vmatpush.msra.mxu3 %v3066_v22 }
 0x35d   :  { %1391 = vmatpush.msra.mxu3 %v3070_v26 }
 0x35f   :  { %1397 = vmatpush.msra.mxu3 %v3077_v30 }
 0x360   :  { %1232 = vmatmul.f32.vlgmr.msrb.gmra.mxu3 %v1131_v37 }
 0x361   :  { %1506 = vmatpush.msrb.mxu3 %v2977_v29 }
 0x363   :  { %1508 = vmatpush.msrb.mxu3 %v2985_v34 }
 0x365   :  { %1510 = vmatpush.msrb.mxu3 %v2998_v41 }
 0x367   :  { %1512 = vmatpush.msrb.mxu3 %v3012_v53 }
 0x3bd   :  { %v1266_v51 = vpop.f32.mrf.mxu0  ;;  %v1291_v52 = vpop.f32.mrf.mxu1 }
 0x3cb   :  { %v1135_v4 = vpop.f32.mrf.mxu3 }
 0x3d3   :  { %v1176_v44 = vpop.f32.mrf.mxu3 }
 0x3d4   :  { %v1177_v45 = vadd.f32 %v1176_v44, %v1135_v4 }
 0x3db   :  { %v1206_v7 = vpop.f32.mrf.mxu3 }
 0x3dc   :  { %v1207_v46 = vadd.f32 %v1206_v7, %v1177_v45 }
 0x3e3   :  { %v1233_v5 = vpop.f32.mrf.mxu3 }
 0x3e4   :  { %v1234_v48 = vadd.f32 %v1233_v5, %v1207_v46 }
 0x3e6   :  { %v1267_v6 = vadd.f32 %v1266_v51, %v1234_v48 }
 0x3e8   :  { %v1292_v60 = vadd.f32 %v1291_v52, %v1267_v6 }
 0x3ea   :  { %v1295_v10 = vrot.slane %v1292_v60, 1  ;;  %v1296_v15 = vperm.slane %v1292_v60, 0 }
 0x3ec   :  { %v1297_v21 = vperm.slane %v1295_v10, 0  ;;  %v3291_v13 = vsub.f32 %v3258_v62, %v1296_v15  ;;  %v3294_v14 = vsub.f32 %v3260_v63, %v1296_v15 }
 0x3ee   :  { %v3296_v23 = vsub.f32 %v1084_v2, %v1297_v21  ;;  %v3298_v0 = vsub.f32 %v1085_v16, %v1297_v21  ;;  %v1304_v3 = vmul.f32 %v3291_v13, %v3291_v13  ;;  %v1305_v18 = vmul.f32 %v3294_v14, %v3294_v14 }
 0x3f0   :  { %v1306_v8 = vmul.f32 %v3296_v23, %v3296_v23  ;;  %v1307_v62 = vmul.f32 %v3298_v0, %v3298_v0  ;;  %v1308_v54 = vsel %vm141_vm0, %v1304_v3, 0.0  ;;  %v1309_v63 = vsel %vm141_vm0, %v1305_v18, 0.0 }
 0x3f1   :  { %v1310_v2 = vadd.f32 %v1309_v63, %v1308_v54 }
 0x3f2   :  { %v1317_v16 = vsel %vm141_vm0, %v1306_v8, 0.0  ;;  %v1318_v9 = vsel %vm141_vm0, %v1307_v62, 0.0 }
 0x3f3   :  { %v1311_v19 = vrot.slane %v1310_v2, 4  ;;  %v1319_v17 = vadd.f32 %v1318_v9, %v1317_v16  ;;  %v2651_v16 = vld [vmem:[#allocation5 + $0x68] sm:$0xff]  ;;  %v2653_v9 = vld [vmem:[#allocation5 + $0x78] sm:$0xff] }
 0x3f4   :  { %1758 = vmatpush.bf16.msra.mxu0 %v2651_v16  ;;  %1799 = vmatpush.bf16.msra.mxu1 %v2653_v9 }
 0x3f5   :  { %v1312_v25 = vadd.f32 %v1311_v19, %v1310_v2  ;;  %v1320_v20 = vrot.slane %v1319_v17, 4  ;;  %v2655_v2 = vld [vmem:[#allocation5 + $0x88] sm:$0xff] }
 0x3f7   :  { %v1313_v27 = vrot.slane %v1312_v25, 2  ;;  %v1321_v47 = vadd.f32 %v1320_v20, %v1319_v17  ;;  %v2673_v17 = vld [vmem:[#allocation8 + $0x1] ss:$0 sm:$0xff]  ;;  %v2650_v20 = vld [vmem:[#allocation5 + $0x60] sm:$0xff] }
 0x3f8   :  { %1759 = vmatpush.bf16.msra.mxu0 %v2650_v20 }
 0x3f9   :  { %v1314_v55 = vadd.f32 %v1313_v27, %v1312_v25  ;;  %v1322_v32 = vrot.slane %v1321_v47, 2  ;;  %v2654_v25 = vld [vmem:[#allocation5 + $0x80] sm:$0xff] }
 0x3fb   :  { %v1315_v59 = vrot.slane %v1314_v55, 1  ;;  %v1323_v28 = vadd.f32 %v1322_v32, %v1321_v47  ;;  %v2652_v47 = vld [vmem:[#allocation5 + $0x70] sm:$0xff] }
 0x3fc   :  { %1800 = vmatpush.bf16.msra.mxu1 %v2652_v47 }
 0x3fd   :  { %v1324_v35 = vrot.slane %v1323_v28, 1  ;;  %v1316_v31 = vadd.f32 %v1315_v59, %v1314_v55 }
 0x3ff   :  { %v1325_v36 = vadd.f32 %v1324_v35, %v1323_v28  ;;  %v2674_v35 = vld [vmem:[%s3602_s4 + $0x1] ss:$0 sm:$0xff] }
 0x401   :  { %v1330_v37 = vsel %vm305_vm3, %v1325_v36, %v1316_v31 }
 0x402   :  { %v1331_v43 = vsel %vm141_vm0, %v1330_v37, 0 }
 0x403   :  { %v1353_v1 = vand.u32 4294901760, %v1331_v43 }
 0x405   :  { %1399 = vmatmul.f32.vlgmr.msra.gmra.mxu3 %v1353_v1  ;;  %v1354_v4 = vsub.f32 %v1331_v43, %v1353_v1 }
 0x406   :  { %1924 = vmatpush.msra.mxu3 %v2977_v29 }
 0x407   :  { %1429 = vmatmul.f32.vlgmr.msrb.gmra.mxu0 %v1354_v4  ;;  %v1355_v44 = vand.u32 4294901760, %v1354_v4 }
 0x408   :  { %1926 = vmatpush.msra.mxu3 %v2985_v34  ;;  %2053 = vmatpush.msrb.mxu0 %v2992_v39 }
 0x409   :  { %1456 = vmatmul.f32.vlgmr.msrb.gmra.mxu1 %v1355_v44  ;;  %v1356_v7 = vsub.f32 %v1354_v4, %v1355_v44 }
 0x40a   :  { %1928 = vmatpush.msra.mxu3 %v2998_v41  ;;  %2084 = vmatpush.msrb.mxu1 %v2977_v29 }
 0x40b   :  { %v1357_v45 = vand.u32 4294901760, %v1356_v7  ;;  %2057 = vmatpush.msrb.mxu0 %v3004_v49 }
 0x40c   :  { %1930 = vmatpush.msra.mxu3 %v3012_v53  ;;  %2086 = vmatpush.msrb.mxu1 %v2985_v34 }
 0x40d   :  { %1358 = vmatmul.f32.vlgmr.msra.gmra.mxu2 %v1357_v45  ;;  %1514 = vmatmul.f32.vlgmr.msrb.gmra.mxu3 %v1353_v1 }
 0x40e   :  { %1957 = vmatpush.msrb.mxu3 %v3056_v12  ;;  %1835 = vmatpush.bf16.msra.mxu2 %v2655_v2 }
 0x40f   :  { %2061 = vmatpush.msrb.mxu0 %v3022_v56  ;;  %2088 = vmatpush.msrb.mxu1 %v2998_v41 }
 0x410   :  { %1963 = vmatpush.msrb.mxu3 %v3066_v22 }
 0x411   :  { %2065 = vmatpush.msrb.mxu0 %v3032_v58  ;;  %2090 = vmatpush.msrb.mxu1 %v3012_v53 }
 0x412   :  { %1969 = vmatpush.msrb.mxu3 %v3070_v26  ;;  %1836 = vmatpush.bf16.msra.mxu2 %v2654_v25 }
 0x414   :  { %1975 = vmatpush.msrb.mxu3 %v3077_v30 }
 0x415   :  { %1489 = vmatmul.f32.vlgmr.msrb.gmra.mxu2 %v1353_v1 }
 0x416   :  { %2148 = vmatpush.msrb.mxu2 %v2977_v29 }
 0x418   :  { %2150 = vmatpush.msrb.mxu2 %v2985_v34 }
 0x41a   :  { %2152 = vmatpush.msrb.mxu2 %v2998_v41 }
 0x41c   :  { %2154 = vmatpush.msrb.mxu2 %v3012_v53 }
 0x484   :  { %v1430_v6 = vpop.f32.mrf.mxu0 }
 0x486   :  { %v1457_v60 = vpop.f32.mrf.mxu1 }
 0x488   :  { %v1400_v46 = vpop.f32.mrf.mxu3 }
 0x490   :  { %v1359_v5 = vpop.f32.mrf.mxu2  ;;  %v1515_v3 = vpop.f32.mrf.mxu3 }
 0x491   :  { %v1360_v48 = vadd.f32 1e-05, %v1359_v5 }
 0x493   :  { %v1401_v51 = vadd.f32 %v1400_v46, %v1360_v48 }
 0x495   :  { %v1431_v52 = vadd.f32 %v1430_v6, %v1401_v51 }
 0x497   :  { %v1458_v10 = vadd.f32 %v1457_v60, %v1431_v52 }
 0x498   :  { %v1490_v15 = vpop.f32.mrf.mxu2 }
 0x499   :  { %v1491_v21 = vadd.f32 %v1490_v15, %v1458_v10 }
 0x49b   :  { %v1516_v18 = vadd.f32 %v1515_v3, %v1491_v21 }
 0x49d   :  { %2696 = vrsqrt.f32 %v1516_v18  ;;  %vm1524_vm4 = vweird.f32 %v1516_v18 }
 0x4a3   :  { %v2697_v8 = vpop.eup %2696 }
 0x4a4   :  { %v1519_v62 = vmul.f32 %v2697_v8, %v1516_v18  ;;  %vm1525_vm15 = vweird.f32 %v2697_v8 }
 0x4a5   :  { %vm1526_vm5 = vmor %vm1524_vm4, %vm1525_vm15 }
 0x4a6   :  { %v1520_v54 = vmul.f32 %v2697_v8, %v1519_v62 }
 0x4a8   :  { %v1521_v63 = vmul.f32 0.5, %v1520_v54 }
 0x4aa   :  { %v1522_v19 = vsub.f32 1.5, %v1521_v63 }
 0x4ac   :  { %v1523_v27 = vmul.f32 %v2697_v8, %v1522_v19 }
 0x4ae   :  { %v1527_v55 = vsel %vm1526_vm5, %v2697_v8, %v1523_v27 }
 0x4af   :  { %v1531_v32 = vmul.f32 %v2673_v17, %v1527_v55 }
 0x4b1   :  { %v1533_v59 = vrot.slane %v1531_v32, 1  ;;  %v1534_v28 = vperm.slane %v1531_v32, 0 }
 0x4b3   :  { %v1535_v31 = vperm.slane %v1533_v59, 0  ;;  %v1538_v36 = vmul.f32 %v1534_v28, %v3291_v13  ;;  %v1539_v37 = vmul.f32 %v1534_v28, %v3294_v14 }
 0x4b5   :  { %v1540_v43 = vmul.f32 %v1535_v31, %v3296_v23  ;;  %v1541_v1 = vmul.f32 %v1535_v31, %v3298_v0  ;;  %v3336_v4 = vadd.f32 %v2674_v35, %v1538_v36  ;;  %v3338_v44 = vadd.f32 %v2674_v35, %v1539_v37 }
 0x4b7   :  { %v3344_v13 = vmul.f32 0.70710677, %v3336_v4  ;;  %v3347_v14 = vmul.f32 0.70710677, %v3338_v44  ;;  %v3350_v23 = vadd.f32 %v2674_v35, %v1540_v43  ;;  %v3352_v0 = vadd.f32 %v2674_v35, %v1541_v1 }
 0x4b9   :  { %v1567_v7 = vand.u32 2147483647, %v3344_v13  ;;  %v1568_v45 = vand.u32 2147483647, %v3347_v14  ;;  %v3358_v48 = vmul.f32 0.70710677, %v3350_v23 }
 0x4ba   :  { %v3361_v51 = vmul.f32 0.70710677, %v3352_v0 }
 0x4bb   :  { %v1571_v46 = vmul.f32 0.3275911, %v1567_v7  ;;  %v1572_v5 = vmul.f32 0.3275911, %v1568_v45  ;;  %v3364_v60 = vand.u32 2147483647, %v3358_v48 }
 0x4bc   :  { %v3367_v10 = vand.u32 2147483647, %v3361_v51  ;;  %v1675_v18 = vsub.f32 0.0, %v1567_v7  ;;  %v1676_v9 = vsub.f32 0.0, %v1568_v45 }
 0x4bd   :  { %v1575_v6 = vadd.f32 1.0, %v1571_v46  ;;  %v1576_v52 = vadd.f32 1.0, %v1572_v5  ;;  %v1573_v15 = vmul.f32 0.3275911, %v3364_v60 }
 0x4be   :  { %v1574_v21 = vmul.f32 0.3275911, %v3367_v10  ;;  %v1679_v17 = vmul.f32 %v1675_v18, %v1567_v7  ;;  %v1680_v59 = vmul.f32 %v1676_v9, %v1568_v45 }
 0x4bf   :  { %2698 = vrcp.f32 %v1575_v6  ;;  %v3371_v8 = vadd.f32 1.0, %v1573_v15  ;;  %v1590_v25 = vand.u32 2147483648, %v1575_v6  ;;  %v1588_v27 = vand.u32 2147483647, %v1575_v6 }
 0x4c0   :  { %2700 = vrcp.f32 %v1576_v52  ;;  %v3373_v62 = vadd.f32 1.0, %v1574_v21  ;;  %v1605_v47 = vand.u32 2147483648, %v1576_v52  ;;  %v1603_v32 = vand.u32 2147483647, %v1576_v52 }
 0x4c1   :  { %2702 = vrcp.f32 %v3371_v8  ;;  %vm1584_vm8 = vweird.f32 %v1575_v6  ;;  %v1683_v31 = vmul.f32 1.442695, %v1679_v17  ;;  %v1591_v36 = vor.u32 1.1754944e-38, %v1590_v25 }
 0x4c2   :  { %2704 = vrcp.f32 %v3373_v62  ;;  %vm1599_vm10 = vweird.f32 %v1576_v52  ;;  %vm1589_vm11 = vcmp.eq.f32.partialorder %v1588_v27, 8.507059e+37  ;;  %v1606_v7 = vor.u32 1.1754944e-38, %v1605_v47 }
 0x4c3   :  { %vm1604_vm13 = vcmp.eq.f32.partialorder %v1603_v32, 8.507059e+37  ;;  %v1685_v21 = vmul.f32 1.442695, %v1680_v59  ;;  %v1635_v17 = vand.u32 2147483648, %v3373_v62  ;;  %vm1614_vm4 = vweird.f32 %v3371_v8 }
 0x4c4   :  { %2706 = vpow2.f32 %v1683_v31 }
 0x4c5   :  { %v2699_v3 = vpop.eup %2698  ;;  %2708 = vpow2.f32 %v1685_v21 }
 0x4c6   :  { %v2701_v54 = vpop.eup %2700  ;;  %v1580_v63 = vmul.f32 %v2699_v3, %v1575_v6  ;;  %vm1585_vm6 = vweird.f32 %v2699_v3 }
 0x4c7   :  { %v1595_v2 = vmul.f32 %v2701_v54, %v1576_v52  ;;  %vm1600_vm7 = vweird.f32 %v2701_v54  ;;  %v2703_v35 = vpop.eup %2702  ;;  %vm1586_vm9 = vmor %vm1584_vm8, %vm1585_vm6  ;;  %v1620_v52 = vand.u32 2147483648, %v3371_v8  ;;  %vm1629_vm6 = vweird.f32 %v3373_v62 }
 0x4c8   :  { %v1581_v16 = vsub.f32 1.0, %v1580_v63  ;;  %v2705_v43 = vpop.eup %2704  ;;  %vm1601_vm12 = vmor %vm1599_vm10, %vm1600_vm7  ;;  %v1610_v46 = vmul.f32 %v2703_v35, %v3371_v8  ;;  %vm1615_vm14 = vweird.f32 %v2703_v35  ;;  %vm1559_vm10 = vcmp.ge.f32.partialorder %v3344_v13, 0.0 }
 0x4c9   :  { %v1596_v19 = vsub.f32 1.0, %v1595_v2  ;;  %v1625_v45 = vmul.f32 %v2705_v43, %v3373_v62  ;;  %vm1630_vm15 = vweird.f32 %v2705_v43  ;;  %vm1616_vm5 = vmor %vm1614_vm4, %vm1615_vm14  ;;  %v1621_v59 = vor.u32 1.1754944e-38, %v1620_v52 }
 0x4ca   :  { %v1582_v20 = vmul.f32 %v2699_v3, %v1581_v16  ;;  %v1611_v63 = vsub.f32 1.0, %v1610_v46  ;;  %v1618_v16 = vand.u32 2147483647, %v3371_v8  ;;  %vm1631_vm8 = vmor %vm1629_vm6, %vm1630_vm15  ;;  %v2707_v31 = vpop.eup %2706 }
 0x4cb   :  { %v1597_v55 = vmul.f32 %v2701_v54, %v1596_v19 }
 0x4cc   :  { %v1583_v28 = vadd.f32 %v2699_v3, %v1582_v20  ;;  %v1612_v19 = vmul.f32 %v2703_v35, %v1611_v63  ;;  %v1633_v20 = vand.u32 2147483647, %v3373_v62  ;;  %vm1619_vm7 = vcmp.eq.f32.partialorder %v1618_v16, 8.507059e+37 }
 0x4cd   :  { %v1598_v37 = vadd.f32 %v2701_v54, %v1597_v55  ;;  %v1677_v55 = vsub.f32 0.0, %v3364_v60  ;;  %v1678_v63 = vsub.f32 0.0, %v3367_v10 }
 0x4ce   :  { %v1587_v1 = vsel %vm1586_vm9, %v2699_v3, %v1583_v28  ;;  %v1626_v3 = vsub.f32 1.0, %v1625_v45  ;;  %v1613_v47 = vadd.f32 %v2703_v35, %v1612_v19  ;;  %vm1634_vm9 = vcmp.eq.f32.partialorder %v1633_v20, 8.507059e+37 }
 0x4cf   :  { %v1592_v5 = vsel %vm1589_vm11, %v1591_v36, %v1587_v1  ;;  %v1602_v15 = vsel %vm1601_vm12, %v2701_v54, %v1598_v37  ;;  %v1636_v1 = vor.u32 1.1754944e-38, %v1635_v17  ;;  %vm1560_vm11 = vcmp.ge.f32.partialorder %v3347_v14, 0.0 }
 0x4d0   :  { %v1607_v6 = vsel %vm1604_vm13, %v1606_v7, %v1602_v15  ;;  %v1639_v18 = vmul.f32 1.0614054, %v1592_v5  ;;  %v1627_v54 = vmul.f32 %v2705_v43, %v1626_v3  ;;  %v1617_v37 = vsel %vm1616_vm5, %v2703_v35, %v1613_v47 }
 0x4d1   :  { %v1640_v2 = vmul.f32 1.0614054, %v1607_v6  ;;  %v1622_v46 = vsel %vm1619_vm7, %v1621_v59, %v1617_v37  ;;  %v1681_v35 = vmul.f32 %v1677_v55, %v3364_v60  ;;  %vm1561_vm12 = vcmp.ge.f32.partialorder %v3358_v48, 0.0 }
 0x4d2   :  { %v1643_v9 = vadd.f32 -1.4531521, %v1639_v18  ;;  %v1628_v28 = vadd.f32 %v2705_v43, %v1627_v54  ;;  %v1641_v8 = vmul.f32 1.0614054, %v1622_v46  ;;  %vm1562_vm13 = vcmp.ge.f32.partialorder %v3361_v51, 0.0 }
 0x4d3   :  { %v1644_v25 = vadd.f32 -1.4531521, %v1640_v2  ;;  %v1687_v59 = vmul.f32 1.442695, %v1681_v35  ;;  %v1566_v48 = vsel %vm1562_vm13, 1.0, %v2895_v24 }
 0x4d4   :  { %v1647_v27 = vmul.f32 %v1643_v9, %v1592_v5  ;;  %v1632_v15 = vsel %vm1631_vm8, %v2705_v43, %v1628_v28  ;;  %v1645_v9 = vadd.f32 -1.4531521, %v1641_v8  ;;  %v1682_v43 = vmul.f32 %v1678_v63, %v3367_v10 }
 0x4d5   :  { %v1648_v32 = vmul.f32 %v1644_v25, %v1607_v6  ;;  %v1637_v18 = vsel %vm1634_vm9, %v1636_v1, %v1632_v15  ;;  %v2709_v15 = vpop.eup %2708  ;;  %2710 = vpow2.f32 %v1687_v59 }
 0x4d6   :  { %v1651_v36 = vadd.f32 1.4214138, %v1647_v27  ;;  %v1642_v3 = vmul.f32 1.0614054, %v1637_v18  ;;  %v1649_v17 = vmul.f32 %v1645_v9, %v1622_v46  ;;  %v1689_v37 = vmul.f32 1.442695, %v1682_v43 }
 0x4d7   :  { %v1652_v7 = vadd.f32 1.4214138, %v1648_v32 }
 0x4d8   :  { %v1655_v45 = vmul.f32 %v1651_v36, %v1592_v5  ;;  %v1646_v19 = vadd.f32 -1.4531521, %v1642_v3  ;;  %v1653_v27 = vadd.f32 1.4214138, %v1649_v17  ;;  %2712 = vpow2.f32 %v1689_v37 }
 0x4d9   :  { %v1656_v2 = vmul.f32 %v1652_v7, %v1607_v6 }
 0x4da   :  { %v1659_v52 = vadd.f32 -0.28449672, %v1655_v45  ;;  %v1650_v54 = vmul.f32 %v1646_v19, %v1637_v18  ;;  %v1657_v36 = vmul.f32 %v1653_v27, %v1622_v46 }
 0x4db   :  { %v1660_v62 = vadd.f32 -0.28449672, %v1656_v2  ;;  %v2711_v35 = vpop.eup %2710 }
 0x4dc   :  { %v1663_v16 = vmul.f32 %v1659_v52, %v1592_v5  ;;  %v1654_v32 = vadd.f32 1.4214138, %v1650_v54  ;;  %v1661_v21 = vadd.f32 -0.28449672, %v1657_v36 }
 0x4dd   :  { %v1664_v25 = vmul.f32 %v1660_v62, %v1607_v6  ;;  %v1551_v62 = vmul.f32 0.5, %v3336_v4 }
 0x4de   :  { %v1667_v20 = vadd.f32 0.2548296, %v1663_v16  ;;  %v1658_v7 = vmul.f32 %v1654_v32, %v1637_v18  ;;  %v1665_v8 = vmul.f32 %v1661_v21, %v1622_v46  ;;  %v1552_v16 = vmul.f32 0.5, %v3338_v44 }
 0x4df   :  { %v1668_v47 = vadd.f32 0.2548296, %v1664_v25  ;;  %v2713_v25 = vpop.eup %2712  ;;  %v1565_v44 = vsel %vm1561_vm12, 1.0, %v2895_v24 }
 0x4e0   :  { %v1671_v28 = vmul.f32 %v1667_v20, %v1592_v5  ;;  %v1662_v55 = vadd.f32 -0.28449672, %v1658_v7  ;;  %v1563_v5 = vsel %vm1559_vm10, 1.0, %v2895_v24  ;;  %v1669_v52 = vadd.f32 0.2548296, %v1665_v8 }
 0x4e1   :  { %v1672_v1 = vmul.f32 %v1668_v47, %v1607_v6  ;;  %v1564_v6 = vsel %vm1560_vm11, 1.0, %v2895_v24 }
 0x4e2   :  { %v1691_v60 = vmul.f32 %v2707_v31, %v1671_v28  ;;  %v1666_v2 = vmul.f32 %v1662_v55, %v1637_v18  ;;  %v1673_v14 = vmul.f32 %v1669_v52, %v1622_v46 }
 0x4e3   :  { %v1692_v10 = vmul.f32 %v2709_v15, %v1672_v1  ;;  %v1553_v1 = vmul.f32 0.5, %v3350_v23 }
 0x4e4   :  { %v1695_v45 = vsub.f32 1.0, %v1691_v60  ;;  %v1670_v13 = vadd.f32 0.2548296, %v1666_v2  ;;  %v1693_v20 = vmul.f32 %v2711_v35, %v1673_v14 }
 0x4e5   :  { %v1696_v63 = vsub.f32 1.0, %v1692_v10 }
 0x4e6   :  { %v1699_v3 = vmul.f32 %v1695_v45, %v1563_v5  ;;  %v1674_v43 = vmul.f32 %v1670_v13, %v1637_v18  ;;  %v1697_v4 = vsub.f32 1.0, %v1693_v20 }
 0x4e7   :  { %v1700_v9 = vmul.f32 %v1696_v63, %v1564_v6  ;;  %v2675_v63 = vld [vmem:[#allocation7 + $0x2] ss:$0 sm:$0xff] }
 0x4e8   :  { %v1703_v19 = vadd.f32 1.0, %v1699_v3  ;;  %v1694_v47 = vmul.f32 %v2713_v25, %v1674_v43  ;;  %v1701_v28 = vmul.f32 %v1697_v4, %v1565_v44 }
 0x4e9   :  { %v1704_v17 = vadd.f32 1.0, %v1700_v9 }
 0x4ea   :  { %v1707_v54 = vmul.f32 %v1703_v19, %v1551_v62  ;;  %v1698_v59 = vsub.f32 1.0, %v1694_v47 }
 0x4eb   :  { %v1708_v27 = vmul.f32 %v1704_v17, %v1552_v16 }
 0x4ec   :  { %v3398_v32 = vadd.f32 %v1707_v54, %v3213_v38  ;;  %v1702_v36 = vmul.f32 %v1698_v59, %v1566_v48  ;;  %v1705_v38 = vadd.f32 1.0, %v1701_v28 }
 0x4ed   :  { %v3401_v46 = vadd.f32 %v1708_v27, %v3216_v61  ;;  %v1554_v61 = vmul.f32 0.5, %v3352_v0 }
 0x4ee   :  { %v1715_v18 = vpack.c.bf16 %v3398_v32, %v3398_v32  ;;  %v1706_v7 = vadd.f32 1.0, %v1702_v36  ;;  %v1709_v60 = vmul.f32 %v1705_v38, %v1553_v1 }
 0x4ef   :  { %v1716_v51 = vpack.c.bf16 %v3401_v46, %v3401_v46 }
 0x4f0   :  { %v1728_v37 = vunpack.c.l.b16 %v1715_v18  ;;  %v1710_v21 = vmul.f32 %v1706_v7, %v1554_v61  ;;  %v3416_v10 = vadd.f32 %v1709_v60, %v3231_v11 }
 0x4f1   :  { %v1729_v31 = vunpack.c.l.b16 %v1716_v51 }
 0x4f2   :  { %v3419_v55 = vadd.f32 %v1710_v21, %v3234_v42  ;;  %v1717_v23 = vpack.c.bf16 %v3416_v10, %v3416_v10 }
 0x4f3   :  { %v1732_v15 = vpack.c.b16 %v1729_v31, %v1728_v37 }
 0x4f4   :  { %v1718_v11 = vpack.c.bf16 %v3419_v55, %v3419_v55 }
 0x4f5   :  { %2615 = vmatmul.msk.bf16.vlgmr.msra.gmra.mxu0 %vm141_vm0, %v1732_v15  ;;  %2625 = vmatmul.msk.bf16.vlgmr.msra.gmra.mxu1 %vm141_vm0, %v1732_v15 }
 0x4f6   :  { %2635 = vmatmul.msk.bf16.vlgmr.msra.gmra.mxu2 %vm141_vm0, %v1732_v15  ;;  %2219 = vmatpush.msra.mxu0 %v2982_v33 }
 0x4f7   :  { %2248 = vmatpush.msra.mxu1 %v2977_v29  ;;  %2277 = vmatpush.msra.mxu2 %v2992_v39  ;;  %v1730_v39 = vunpack.c.l.b16 %v1717_v23 }
 0x4f8   :  { %2222 = vmatpush.msra.mxu0 %v2995_v40 }
 0x4f9   :  { %2250 = vmatpush.msra.mxu1 %v2985_v34  ;;  %2281 = vmatpush.msra.mxu2 %v3004_v49  ;;  %v1731_v49 = vunpack.c.l.b16 %v1718_v11 }
 0x4fa   :  { %2225 = vmatpush.msra.mxu0 %v3007_v50 }
 0x4fb   :  { %2252 = vmatpush.msra.mxu1 %v2998_v41  ;;  %2285 = vmatpush.msra.mxu2 %v3022_v56  ;;  %v1733_v42 = vpack.c.b16 %v1731_v49, %v1730_v39 }
 0x4fc   :  { %2228 = vmatpush.msra.mxu0 %v3025_v57 }
 0x4fd   :  { %2254 = vmatpush.msra.mxu1 %v3012_v53  ;;  %2289 = vmatpush.msra.mxu2 %v3032_v58 }
 0x505   :  { %2616 = vmatmul.msk.bf16.gmra.mxu0 %vm141_vm0, %v1733_v42  ;;  %2626 = vmatmul.msk.bf16.gmra.mxu1 %vm141_vm0, %v1733_v42 }
 0x506   :  { %2636 = vmatmul.msk.bf16.gmra.mxu2 %vm141_vm0, %v1733_v42 }
 0x572   :  { %v1761_v0 = vpop.f32.mrf.mxu0  ;;  %v1802_v45 = vpop.f32.mrf.mxu1 }
 0x573   :  { %v1852_v2 = vrot.slane %v1761_v0, 7  ;;  %v1803_v3 = vadd.f32 %v2675_v63, %v1802_v45 }
 0x575   :  { %v1862_v58 = vsel %vm247_vm1, 0.0, %v1852_v2 }
 0x576   :  { %v1864_v16 = vadd.f32 %v1862_v58, %v1803_v3 }
 0x579   :  { %v1838_v8 = vpop.f32.mrf.mxu2 }
 0x57a   :  { %v1763_v5 = vpop.f32.mrf.mxu0  ;;  %v1804_v56 = vpop.f32.mrf.mxu1  ;;  %v1872_v62 = vrot.slane %v1838_v8, 1 }
 0x57b   :  { %v1853_v6 = vrot.slane %v1763_v5, 7  ;;  %v1805_v52 = vadd.f32 %v2675_v63, %v1804_v56 }
 0x57d   :  { %v1854_v9 = vsel %vm247_vm1, %v1852_v2, %v1853_v6 }
 0x57e   :  { %v1865_v17 = vadd.f32 %v1854_v9, %v1805_v52 }
 0x581   :  { %v1840_v13 = vpop.f32.mrf.mxu2 }
 0x582   :  { %v1873_v19 = vrot.slane %v1840_v13, 1  ;;  %v1766_v14 = vpop.f32.mrf.mxu0  ;;  %v1807_v35 = vpop.f32.mrf.mxu1 }
 0x583   :  { %v1855_v18 = vrot.slane %v1766_v14, 7  ;;  %v1808_v51 = vadd.f32 %v2675_v63, %v1807_v35 }
 0x584   :  { %v1874_v43 = vsel %vm268_vm2, %v1872_v62, %v1873_v19  ;;  %v1882_v25 = vsel %vm268_vm2, %v1873_v19, 0.0 }
 0x585   :  { %v3443_v54 = vadd.f32 %v1874_v43, %v1864_v16  ;;  %v3445_v20 = vadd.f32 %v1882_v25, %v1865_v17  ;;  %v1863_v38 = vsel %vm247_vm1, 0.0, %v1855_v18 }
 0x586   :  { %v1866_v15 = vadd.f32 %v1863_v38, %v1808_v51 }
 0x587   :  { %v1888_v27 = vsel %vm141_vm0, %v3443_v54, 0.0  ;;  %v1889_v47 = vsel %vm141_vm0, %v3445_v20, 0.0 }
 0x588   :  { %v1890_v59 = vadd.f32 %v1889_v47, %v1888_v27 }
 0x589   :  { %v1843_v4 = vpop.f32.mrf.mxu2 }
 0x58a   :  { %v1768_v44 = vpop.f32.mrf.mxu0  ;;  %v1809_v28 = vpop.f32.mrf.mxu1  ;;  %v1891_v37 = vrot.slane %v1890_v59, 4  ;;  %v1875_v61 = vrot.slane %v1843_v4, 1 }
 0x58b   :  { %v1856_v48 = vrot.slane %v1768_v44, 7  ;;  %v1810_v36 = vadd.f32 %v2675_v63, %v1809_v28 }
 0x58c   :  { %v1892_v21 = vadd.f32 %v1891_v37, %v1890_v59 }
 0x58d   :  { %v1857_v31 = vsel %vm247_vm1, %v1855_v18, %v1856_v48 }
 0x58e   :  { %v1867_v60 = vadd.f32 %v1857_v31, %v1810_v36  ;;  %v1893_v45 = vrot.slane %v1892_v21, 2 }
 0x590   :  { %v1894_v56 = vadd.f32 %v1893_v45, %v1892_v21 }
 0x591   :  { %v1845_v1 = vpop.f32.mrf.mxu2 }
 0x592   :  { %v1876_v7 = vrot.slane %v1845_v1, 1  ;;  %v1895_v6 = vrot.slane %v1894_v56, 1 }
 0x594   :  { %v1877_v23 = vsel %vm268_vm2, %v1875_v61, %v1876_v7  ;;  %v1883_v11 = vsel %vm268_vm2, %v1876_v7, 0.0  ;;  %v1896_v58 = vadd.f32 %v1895_v6, %v1894_v56 }
 0x595   :  { %v1886_v39 = vadd.f32 %v1877_v23, %v1866_v15  ;;  %v1887_v49 = vadd.f32 %v1883_v11, %v1867_v60 }
 0x597   :  { %v1897_v42 = vsel %vm141_vm0, %v1886_v39, 0.0  ;;  %v1898_v0 = vsel %vm141_vm0, %v1887_v49, 0.0 }
 0x598   :  { %v1899_v8 = vadd.f32 %v1898_v0, %v1897_v42 }
 0x59a   :  { %v1900_v5 = vrot.slane %v1899_v8, 4 }
 0x59c   :  { %v1901_v63 = vadd.f32 %v1900_v5, %v1899_v8 }
 0x59e   :  { %v1902_v2 = vrot.slane %v1901_v63, 2 }
 0x5a0   :  { %v1903_v3 = vadd.f32 %v1902_v2, %v1901_v63 }
 0x5a2   :  { %v1904_v52 = vrot.slane %v1903_v3, 1 }
 0x5a4   :  { %v1905_v9 = vadd.f32 %v1904_v52, %v1903_v3 }
 0x5a6   :  { %v1908_v13 = vsel %vm305_vm3, %v1905_v9, %v1896_v58 }
 0x5a7   :  { %v1909_v62 = vsel %vm141_vm0, %v1908_v13, 0 }
 0x5a8   :  { %v1931_v19 = vand.u32 4294901760, %v1909_v62 }
 0x5aa   :  { %v1932_v14 = vsub.f32 %v1909_v62, %v1931_v19  ;;  %2067 = vmatmul.f32.vlgmr.msrb.gmra.mxu0 %v1931_v19  ;;  %2092 = vmatmul.f32.vlgmr.msrb.gmra.mxu1 %v1931_v19 }
 0x5ac   :  { %v1933_v35 = vand.u32 4294901760, %v1932_v14 }
 0x5ae   :  { %v1934_v16 = vsub.f32 %v1932_v14, %v1933_v35 }
 0x5b0   :  { %v1935_v17 = vand.u32 4294901760, %v1934_v16 }
 0x5b2   :  { %1936 = vmatmul.f32.vlgmr.msra.gmra.mxu3 %v1935_v17 }
 0x5b3   :  { %1995 = vmatpush.msra.mxu3 %v2982_v33 }
 0x5b5   :  { %1998 = vmatpush.msra.mxu3 %v2995_v40 }
 0x5b7   :  { %2001 = vmatpush.msra.mxu3 %v3007_v50 }
 0x5b9   :  { %2004 = vmatpush.msra.mxu3 %v3025_v57 }
 0x5ba   :  { %1977 = vmatmul.f32.vlgmr.msrb.gmra.mxu3 %v1931_v19 }
 0x5bb   :  { %2024 = vmatpush.msrb.mxu3 %v2977_v29 }
 0x5bd   :  { %2026 = vmatpush.msrb.mxu3 %v2985_v34 }
 0x5bf   :  { %2028 = vmatpush.msrb.mxu3 %v2998_v41 }
 0x5c1   :  { %2030 = vmatpush.msrb.mxu3 %v3012_v53 }
 0x5c2   :  { %2007 = vmatmul.f32.vlgmr.msra.gmra.mxu3 %v1932_v14 }
 0x5c3   :  { %2181 = vmatpush.msra.mxu3 %v3056_v12 }
 0x5c5   :  { %2187 = vmatpush.msra.mxu3 %v3066_v22 }
 0x5c7   :  { %2193 = vmatpush.msra.mxu3 %v3070_v26 }
 0x5c9   :  { %2199 = vmatpush.msra.mxu3 %v3077_v30 }
 0x5ca   :  { %2034 = vmatmul.f32.vlgmr.msrb.gmra.mxu3 %v1933_v35 }
 0x5cb   :  { %2308 = vmatpush.msrb.mxu3 %v2977_v29 }
 0x5cd   :  { %2310 = vmatpush.msrb.mxu3 %v2985_v34 }
 0x5cf   :  { %2312 = vmatpush.msrb.mxu3 %v2998_v41 }
 0x5d1   :  { %2314 = vmatpush.msrb.mxu3 %v3012_v53 }
 0x627   :  { %v2068_v25 = vpop.f32.mrf.mxu0  ;;  %v2093_v27 = vpop.f32.mrf.mxu1 }
 0x635   :  { %v1937_v33 = vpop.f32.mrf.mxu3 }
 0x63d   :  { %v1978_v40 = vpop.f32.mrf.mxu3 }
 0x63e   :  { %v1979_v57 = vadd.f32 %v1978_v40, %v1937_v33 }
 0x645   :  { %v2008_v50 = vpop.f32.mrf.mxu3 }
 0x646   :  { %v2009_v12 = vadd.f32 %v2008_v50, %v1979_v57 }
 0x64d   :  { %v2035_v43 = vpop.f32.mrf.mxu3 }
 0x64e   :  { %v2036_v22 = vadd.f32 %v2035_v43, %v2009_v12  ;;  %v2676_v43 = vld [vmem:[#allocation8 + $0x2] ss:$0 sm:$0xff] }
 0x650   :  { %v2069_v26 = vadd.f32 %v2068_v25, %v2036_v22 }
 0x652   :  { %v2094_v30 = vadd.f32 %v2093_v27, %v2069_v26 }
 0x654   :  { %v2097_v47 = vrot.slane %v2094_v30, 1  ;;  %v2098_v4 = vperm.slane %v2094_v30, 0 }
 0x656   :  { %v2099_v29 = vperm.slane %v2097_v47, 0  ;;  %v3476_v34 = vsub.f32 %v3443_v54, %v2098_v4  ;;  %v3479_v41 = vsub.f32 %v3445_v20, %v2098_v4  ;;  %v2677_v47 = vld [vmem:[%s3602_s4 + $0x2] ss:$0 sm:$0xff]  ;;  %s2896_s4 = smov [#allocation11]  }
 0x657   :  { %s2529_s29 = sshll.u32 %s2896_s4, 4  ;;  %s2530_s29 = int_to_ptr.vmem [resolvable:$true] %s2529_s29 }
 0x658   :  { %v3481_v53 = vsub.f32 %v1886_v39, %v2099_v29  ;;  %v3483_v44 = vsub.f32 %v1887_v49, %v2099_v29  ;;  %v2106_v59 = vmul.f32 %v3476_v34, %v3476_v34  ;;  %v2107_v18 = vmul.f32 %v3479_v41, %v3479_v41 }
 0x65a   :  { %v2108_v48 = vmul.f32 %v3481_v53, %v3481_v53  ;;  %v2109_v54 = vmul.f32 %v3483_v44, %v3483_v44  ;;  %v2110_v28 = vsel %vm141_vm0, %v2106_v59, 0.0  ;;  %v2111_v20 = vsel %vm141_vm0, %v2107_v18, 0.0 }
 0x65b   :  { %v2112_v51 = vadd.f32 %v2111_v20, %v2110_v28 }
 0x65c   :  { %v2119_v36 = vsel %vm141_vm0, %v2108_v48, 0.0  ;;  %v2120_v37 = vsel %vm141_vm0, %v2109_v54, 0.0 }
 0x65d   :  { %v2113_v38 = vrot.slane %v2112_v51, 4  ;;  %v2121_v31 = vadd.f32 %v2120_v37, %v2119_v36 }
 0x65f   :  { %v2114_v1 = vadd.f32 %v2113_v38, %v2112_v51  ;;  %v2122_v61 = vrot.slane %v2121_v31, 4 }
 0x661   :  { %v2115_v7 = vrot.slane %v2114_v1, 2  ;;  %v2123_v15 = vadd.f32 %v2122_v61, %v2121_v31 }
 0x663   :  { %v2116_v60 = vadd.f32 %v2115_v7, %v2114_v1  ;;  %v2124_v21 = vrot.slane %v2123_v15, 2 }
 0x665   :  { %v2117_v23 = vrot.slane %v2116_v60, 1  ;;  %v2125_v11 = vadd.f32 %v2124_v21, %v2123_v15 }
 0x667   :  { %v2126_v39 = vrot.slane %v2125_v11, 1  ;;  %v2118_v49 = vadd.f32 %v2117_v23, %v2116_v60 }
 0x669   :  { %v2127_v42 = vadd.f32 %v2126_v39, %v2125_v11 }
 0x66b   :  { %v2132_v0 = vsel %vm305_vm3, %v2127_v42, %v2118_v49 }
 0x66c   :  { %v2133_v45 = vsel %vm141_vm0, %v2132_v0, 0 }
 0x66d   :  { %v2155_v8 = vand.u32 4294901760, %v2133_v45 }
 0x66f   :  { %2201 = vmatmul.f32.vlgmr.msra.gmra.mxu3 %v2155_v8  ;;  %v2156_v5 = vsub.f32 %v2133_v45, %v2155_v8 }
 0x671   :  { %2231 = vmatmul.f32.vlgmr.msra.gmra.mxu0 %v2156_v5  ;;  %v2157_v56 = vand.u32 4294901760, %v2156_v5 }
 0x673   :  { %2258 = vmatmul.f32.vlgmr.msra.gmra.mxu1 %v2157_v56  ;;  %v2158_v63 = vsub.f32 %v2156_v5, %v2157_v56 }
 0x675   :  { %v2159_v2 = vand.u32 4294901760, %v2158_v63 }
 0x677   :  { %2160 = vmatmul.f32.vlgmr.msrb.gmra.mxu2 %v2159_v2  ;;  %2316 = vmatmul.f32.vlgmr.msrb.gmra.mxu3 %v2155_v8 }
 0x67f   :  { %2291 = vmatmul.f32.vlgmr.msra.gmra.mxu2 %v2155_v8 }
 0x6ee   :  { %v2232_v9 = vpop.f32.mrf.mxu0 }
 0x6f0   :  { %v2259_v62 = vpop.f32.mrf.mxu1 }
 0x6f2   :  { %v2202_v6 = vpop.f32.mrf.mxu3 }
 0x6fa   :  { %v2161_v3 = vpop.f32.mrf.mxu2  ;;  %v2317_v16 = vpop.f32.mrf.mxu3 }
 0x6fb   :  { %v2162_v52 = vadd.f32 1e-05, %v2161_v3 }
 0x6fd   :  { %v2203_v58 = vadd.f32 %v2202_v6, %v2162_v52 }
 0x6ff   :  { %v2233_v13 = vadd.f32 %v2232_v9, %v2203_v58 }
 0x701   :  { %v2260_v19 = vadd.f32 %v2259_v62, %v2233_v13 }
 0x702   :  { %v2292_v14 = vpop.f32.mrf.mxu2 }
 0x703   :  { %v2293_v35 = vadd.f32 %v2292_v14, %v2260_v19 }
 0x705   :  { %v2318_v17 = vadd.f32 %v2317_v16, %v2293_v35 }
 0x707   :  { %2714 = vrsqrt.f32 %v2318_v17  ;;  %vm2326_vm2 = vweird.f32 %v2318_v17 }
 0x70d   :  { %v2715_v33 = vpop.eup %2714 }
 0x70e   :  { %v2321_v40 = vmul.f32 %v2715_v33, %v2318_v17  ;;  %vm2327_vm1 = vweird.f32 %v2715_v33 }
 0x70f   :  { %vm2328_vm3 = vmor %vm2326_vm2, %vm2327_vm1 }
 0x710   :  { %v2322_v50 = vmul.f32 %v2715_v33, %v2321_v40 }
 0x712   :  { %v2323_v57 = vmul.f32 0.5, %v2322_v50 }
 0x714   :  { %v2324_v12 = vsub.f32 1.5, %v2323_v57 }
 0x716   :  { %v2325_v22 = vmul.f32 %v2715_v33, %v2324_v12 }
 0x718   :  { %v2329_v25 = vsel %vm2328_vm3, %v2715_v33, %v2325_v22 }
 0x719   :  { %v2333_v26 = vmul.f32 %v2676_v43, %v2329_v25 }
 0x71b   :  { %v2335_v27 = vrot.slane %v2333_v26, 1  ;;  %v2336_v30 = vperm.slane %v2333_v26, 0 }
 0x71d   :  { %v2337_v4 = vperm.slane %v2335_v27, 0  ;;  %v2340_v29 = vmul.f32 %v2336_v30, %v3476_v34  ;;  %v2341_v59 = vmul.f32 %v2336_v30, %v3479_v41 }
 0x71f   :  { %v2342_v18 = vmul.f32 %v2337_v4, %v3481_v53  ;;  %v2343_v48 = vmul.f32 %v2337_v4, %v3483_v44  ;;  %v3506_v54 = vadd.f32 %v2677_v47, %v2340_v29  ;;  %v3508_v28 = vadd.f32 %v2677_v47, %v2341_v59 }
 0x721   :  { %v3510_v20 = vadd.f32 %v2677_v47, %v2342_v18  ;;  %v3512_v51 = vadd.f32 %v2677_v47, %v2343_v48  ;;  %v3515_v36 = vmul.f32 0.70710677, %v3506_v54  ;;  %v3518_v37 = vmul.f32 0.70710677, %v3508_v28 }
 0x723   :  { %v3521_v34 = vmul.f32 0.70710677, %v3510_v20  ;;  %v3524_v41 = vmul.f32 0.70710677, %v3512_v51  ;;  %v3527_v53 = vand.u32 2147483647, %v3515_v36 }
 0x724   :  { %v3530_v44 = vand.u32 2147483647, %v3518_v37 }
 0x725   :  { %v3533_v38 = vand.u32 2147483647, %v3521_v34  ;;  %v3536_v31 = vand.u32 2147483647, %v3524_v41  ;;  %v2373_v1 = vmul.f32 0.3275911, %v3527_v53 }
 0x726   :  { %v2374_v61 = vmul.f32 0.3275911, %v3530_v44  ;;  %v2477_v0 = vsub.f32 0.0, %v3527_v53  ;;  %v2478_v56 = vsub.f32 0.0, %v3530_v44 }
 0x727   :  { %v2375_v7 = vmul.f32 0.3275911, %v3533_v38  ;;  %v2376_v15 = vmul.f32 0.3275911, %v3536_v31  ;;  %v2377_v60 = vadd.f32 1.0, %v2373_v1  ;;  %v2479_v63 = vsub.f32 0.0, %v3533_v38 }
 0x728   :  { %v2378_v21 = vadd.f32 1.0, %v2374_v61 }
 0x729   :  { %v2379_v23 = vadd.f32 1.0, %v2375_v7  ;;  %v3542_v11 = vadd.f32 1.0, %v2376_v15  ;;  %2716 = vrcp.f32 %v2377_v60  ;;  %v2390_v39 = vand.u32 2147483647, %v2377_v60 }
 0x72a   :  { %2718 = vrcp.f32 %v2378_v21  ;;  %v2392_v49 = vand.u32 2147483648, %v2377_v60  ;;  %v2405_v45 = vand.u32 2147483647, %v2378_v21  ;;  %vm2386_vm14 = vweird.f32 %v2377_v60 }
 0x72b   :  { %2720 = vrcp.f32 %v2379_v23  ;;  %vm2401_vm15 = vweird.f32 %v2378_v21  ;;  %v2407_v3 = vand.u32 2147483648, %v2378_v21  ;;  %vm2416_vm4 = vweird.f32 %v2379_v23 }
 0x72c   :  { %2722 = vrcp.f32 %v3542_v11  ;;  %vm3548_vm5 = vcmp.eq.f32.partialorder %v2390_v39, 8.507059e+37  ;;  %v2393_v62 = vor.u32 1.1754944e-38, %v2392_v49  ;;  %vm3553_vm6 = vcmp.eq.f32.partialorder %v2405_v45, 8.507059e+37 }
 0x72d   :  { %v2420_v16 = vand.u32 2147483647, %v2379_v23  ;;  %v2422_v40 = vand.u32 2147483648, %v2379_v23  ;;  %v2408_v12 = vor.u32 1.1754944e-38, %v2407_v3  ;;  %v2437_v25 = vand.u32 2147483648, %v3542_v11 }
 0x72e   :  { %v2435_v30 = vand.u32 2147483647, %v3542_v11  ;;  %vm2431_vm2 = vweird.f32 %v3542_v11  ;;  %v2480_v49 = vsub.f32 0.0, %v3536_v31 }
 0x72f   :  { %v2717_v42 = vpop.eup %2716  ;;  %vm2421_vm13 = vcmp.eq.f32.partialorder %v2420_v16, 8.507059e+37  ;;  %v2423_v29 = vor.u32 1.1754944e-38, %v2422_v40  ;;  %v2438_v7 = vor.u32 1.1754944e-38, %v2437_v25 }
 0x730   :  { %v2719_v8 = vpop.eup %2718  ;;  %v2382_v5 = vmul.f32 %v2717_v42, %v2377_v60  ;;  %vm2387_vm7 = vweird.f32 %v2717_v42 }
 0x731   :  { %v2721_v2 = vpop.eup %2720  ;;  %v2397_v6 = vmul.f32 %v2719_v8, %v2378_v21  ;;  %vm2402_vm8 = vweird.f32 %v2719_v8  ;;  %vm2388_vm10 = vmor %vm2386_vm14, %vm2387_vm7  ;;  %vm2436_vm14 = vcmp.eq.f32.partialorder %v2435_v30, 8.507059e+37 }
 0x732   :  { %v2723_v52 = vpop.eup %2722  ;;  %v2383_v58 = vsub.f32 1.0, %v2382_v5  ;;  %v2412_v9 = vmul.f32 %v2721_v2, %v2379_v23  ;;  %vm2417_vm9 = vweird.f32 %v2721_v2  ;;  %vm2403_vm12 = vmor %vm2401_vm15, %vm2402_vm8  ;;  %vm2361_vm15 = vcmp.ge.f32.partialorder %v3515_v36, 0.0 }
 0x733   :  { %v2398_v19 = vsub.f32 1.0, %v2397_v6  ;;  %v2427_v14 = vmul.f32 %v2723_v52, %v3542_v11  ;;  %vm2432_vm11 = vweird.f32 %v2723_v52  ;;  %vm2418_vm1 = vmor %vm2416_vm4, %vm2417_vm9  ;;  %v2482_v6 = vmul.f32 %v2478_v56, %v3530_v44 }
 0x734   :  { %v2413_v17 = vsub.f32 1.0, %v2412_v9  ;;  %v2384_v33 = vmul.f32 %v2717_v42, %v2383_v58  ;;  %vm2433_vm3 = vmor %vm2431_vm2, %vm2432_vm11  ;;  %v2483_v58 = vmul.f32 %v2479_v63, %v3533_v38  ;;  %vm2362_vm4 = vcmp.ge.f32.partialorder %v3518_v37, 0.0 }
 0x735   :  { %v2428_v50 = vsub.f32 1.0, %v2427_v14  ;;  %v2399_v57 = vmul.f32 %v2719_v8, %v2398_v19  ;;  %v2366_v36 = vsel %vm2362_vm4, 1.0, %v2895_v24 }
 0x736   :  { %v2385_v43 = vadd.f32 %v2717_v42, %v2384_v33  ;;  %v2414_v22 = vmul.f32 %v2721_v2, %v2413_v17  ;;  %v2487_v17 = vmul.f32 1.442695, %v2482_v6 }
 0x737   :  { %v2400_v26 = vadd.f32 %v2719_v8, %v2399_v57  ;;  %v2429_v27 = vmul.f32 %v2723_v52, %v2428_v50 }
 0x738   :  { %v2389_v47 = vsel %vm2388_vm10, %v2717_v42, %v2385_v43  ;;  %v2415_v4 = vadd.f32 %v2721_v2, %v2414_v22 }
 0x739   :  { %v2394_v59 = vsel %vm3548_vm5, %v2393_v62, %v2389_v47  ;;  %v2404_v18 = vsel %vm2403_vm12, %v2719_v8, %v2400_v26  ;;  %v2430_v48 = vadd.f32 %v2723_v52, %v2429_v27  ;;  %v2481_v8 = vmul.f32 %v2477_v0, %v3527_v53 }
 0x73a   :  { %v2409_v1 = vsel %vm3553_vm6, %v2408_v12, %v2404_v18  ;;  %v2419_v61 = vsel %vm2418_vm1, %v2721_v2, %v2415_v4  ;;  %v2441_v15 = vmul.f32 1.0614054, %v2394_v59  ;;  %v2489_v0 = vmul.f32 1.442695, %v2483_v58 }
 0x73b   :  { %v2424_v60 = vsel %vm2421_vm13, %v2423_v29, %v2419_v61  ;;  %v2434_v21 = vsel %vm2433_vm3, %v2723_v52, %v2430_v48  ;;  %v2442_v39 = vmul.f32 1.0614054, %v2409_v1  ;;  %v2484_v52 = vmul.f32 %v2480_v49, %v3536_v31 }
 0x73c   :  { %v2439_v42 = vsel %vm2436_vm14, %v2438_v7, %v2434_v21  ;;  %v2443_v45 = vmul.f32 1.0614054, %v2424_v60  ;;  %v2445_v23 = vadd.f32 -1.4531521, %v2441_v15  ;;  %v2485_v14 = vmul.f32 1.442695, %v2481_v8 }
 0x73d   :  { %v2444_v5 = vmul.f32 1.0614054, %v2439_v42  ;;  %v2446_v11 = vadd.f32 -1.4531521, %v2442_v39  ;;  %v2491_v44 = vmul.f32 1.442695, %v2484_v52 }
 0x73e   :  { %v2447_v3 = vadd.f32 -1.4531521, %v2443_v45  ;;  %v2449_v2 = vmul.f32 %v2445_v23, %v2394_v59  ;;  %2724 = vpow2.f32 %v2485_v14  ;;  %vm2363_vm5 = vcmp.ge.f32.partialorder %v3521_v34, 0.0 }
 0x73f   :  { %v2448_v9 = vadd.f32 -1.4531521, %v2444_v5  ;;  %v2450_v13 = vmul.f32 %v2446_v11, %v2409_v1  ;;  %2726 = vpow2.f32 %v2487_v17  ;;  %vm2364_vm6 = vcmp.ge.f32.partialorder %v3524_v41, 0.0 }
 0x740   :  { %v2451_v62 = vmul.f32 %v2447_v3, %v2424_v60  ;;  %v2453_v19 = vadd.f32 1.4214138, %v2449_v2  ;;  %2728 = vpow2.f32 %v2489_v0  ;;  %v2367_v6 = vsel %vm2363_vm5, 1.0, %v2895_v24 }
 0x741   :  { %v2452_v35 = vmul.f32 %v2448_v9, %v2439_v42  ;;  %v2454_v16 = vadd.f32 1.4214138, %v2450_v13  ;;  %2730 = vpow2.f32 %v2491_v44  ;;  %v2353_v3 = vmul.f32 0.5, %v3506_v54 }
 0x742   :  { %v2455_v33 = vadd.f32 1.4214138, %v2451_v62  ;;  %v2457_v53 = vmul.f32 %v2453_v19, %v2394_v59  ;;  %v2368_v34 = vsel %vm2364_vm6, 1.0, %v2895_v24  ;;  %v2354_v41 = vmul.f32 0.5, %v3508_v28 }
 0x743   :  { %v2456_v40 = vadd.f32 1.4214138, %v2452_v35  ;;  %v2458_v50 = vmul.f32 %v2454_v16, %v2409_v1  ;;  %v2355_v52 = vmul.f32 0.5, %v3510_v20  ;;  %v2356_v14 = vmul.f32 0.5, %v3512_v51 }
 0x744   :  { %v2459_v56 = vmul.f32 %v2455_v33, %v2424_v60  ;;  %v2461_v57 = vadd.f32 -0.28449672, %v2457_v53  ;;  %v2725_v29 = vpop.eup %2724 }
 0x745   :  { %v2460_v38 = vmul.f32 %v2456_v40, %v2439_v42  ;;  %v2462_v63 = vadd.f32 -0.28449672, %v2458_v50  ;;  %v2727_v61 = vpop.eup %2726 }
 0x746   :  { %v2463_v12 = vadd.f32 -0.28449672, %v2459_v56  ;;  %v2465_v31 = vmul.f32 %v2461_v57, %v2394_v59  ;;  %v2729_v21 = vpop.eup %2728 }
 0x747   :  { %v2464_v43 = vadd.f32 -0.28449672, %v2460_v38  ;;  %v2466_v22 = vmul.f32 %v2462_v63, %v2409_v1  ;;  %v2731_v45 = vpop.eup %2730 }
 0x748   :  { %v2467_v25 = vmul.f32 %v2463_v12, %v2424_v60  ;;  %v2469_v26 = vadd.f32 0.2548296, %v2465_v31 }
 0x749   :  { %v2468_v27 = vmul.f32 %v2464_v43, %v2439_v42  ;;  %v2470_v30 = vadd.f32 0.2548296, %v2466_v22 }
 0x74a   :  { %v2471_v47 = vadd.f32 0.2548296, %v2467_v25  ;;  %v2473_v4 = vmul.f32 %v2469_v26, %v2394_v59  ;;  %v2365_v59 = vsel %vm2361_vm15, 1.0, %v2895_v24 }
 0x74b   :  { %v2472_v18 = vadd.f32 0.2548296, %v2468_v27  ;;  %v2474_v48 = vmul.f32 %v2470_v30, %v2409_v1 }
 0x74c   :  { %v2475_v7 = vmul.f32 %v2471_v47, %v2424_v60  ;;  %v2493_v15 = vmul.f32 %v2725_v29, %v2473_v4 }
 0x74d   :  { %v2476_v39 = vmul.f32 %v2472_v18, %v2439_v42  ;;  %v2494_v49 = vmul.f32 %v2727_v61, %v2474_v48 }
 0x74e   :  { %v2495_v23 = vmul.f32 %v2729_v21, %v2475_v7  ;;  %v2497_v8 = vsub.f32 1.0, %v2493_v15 }
 0x74f   :  { %v2496_v1 = vmul.f32 %v2731_v45, %v2476_v39  ;;  %v2498_v5 = vsub.f32 1.0, %v2494_v49 }
 0x750   :  { %v2499_v60 = vsub.f32 1.0, %v2495_v23  ;;  %v2501_v11 = vmul.f32 %v2497_v8, %v2365_v59 }
 0x751   :  { %v2500_v37 = vsub.f32 1.0, %v2496_v1  ;;  %v2502_v42 = vmul.f32 %v2498_v5, %v2366_v36 }
 0x752   :  { %v2503_v2 = vmul.f32 %v2499_v60, %v2367_v6  ;;  %v2505_v58 = vadd.f32 1.0, %v2501_v11 }
 0x753   :  { %v2504_v9 = vmul.f32 %v2500_v37, %v2368_v34  ;;  %v2506_v13 = vadd.f32 1.0, %v2502_v42 }
 0x754   :  { %v2507_v62 = vadd.f32 1.0, %v2503_v2  ;;  %v2509_v19 = vmul.f32 %v2505_v58, %v2353_v3 }
 0x755   :  { %v2508_v35 = vadd.f32 1.0, %v2504_v9  ;;  %v2510_v16 = vmul.f32 %v2506_v13, %v2354_v41 }
 0x756   :  { %v2511_v17 = vmul.f32 %v2507_v62, %v2355_v52  ;;  %v2513_v33 = vadd.f32 %v2509_v19, %v3398_v32 }
 0x757   :  { %v2512_v54 = vmul.f32 %v2508_v35, %v2356_v14  ;;  %v2514_v24 = vadd.f32 %v2510_v16, %v3401_v46 }
 0x758   :  { %v2515_v53 = vadd.f32 %v2511_v17, %v3416_v10  ;;  %v2517_v0 = vmul.f32 0.33333334, %v2513_v33 }
 0x759   :  { %v2516_v28 = vadd.f32 %v2512_v54, %v3419_v55  ;;  %v2518_v20 = vmul.f32 0.33333334, %v2514_v24 }
 0x75a   :  { %v2519_v51 = vmul.f32 0.33333334, %v2515_v53  ;;  %2521 = vst.msk [vmem:[#allocation11] sm:$0xff] %vm141_vm0, %v2517_v0 }
 0x75b   :  { %v2520_v40 = vmul.f32 0.33333334, %v2516_v28  ;;  %2522 = vst.msk [vmem:[#allocation11 + $0x8] sm:$0xff] %vm141_vm0, %v2518_v20 }
 0x75c   :  { %2523 = vst.msk [vmem:[#allocation11 + $0x10] sm:$0xff] %vm141_vm0, %v2519_v51 }
 0x75d   :  { %2524 = vst.msk [vmem:[#allocation11 + $0x18] sm:$0xff] %vm141_vm0, %v2520_v40 }
 0x75e   :  { %2537 = dma.vmem_to_hbm [thread:$0]  %s2530_s29, 512, %s2532_s8, [#allocation4], %s2891_s3, %s2891_s3, %s2892_s18  }
 0x75f   :  { %2882 = dma.done.wait [#allocation4], 512  }
 0x760   :  { %2883 = vsyncadd [#allocation4], 4294966784 }
 0x761   :  { %2542 = vsyncpa [#allocation3], 1 }
 0x762   :  { %2543 = vsyncpa [#allocation6], 1 }
 0x763   :  { %2544 = vsyncpa [#allocation9], 1 }
 0x764   :  { %2545 = vsyncpa [#allocation4], 1 }

</bundles_post_ra>
